<compile_context>
chip_gen: v7x
topology: tpu7x:2x2x1
jax: 0.10.0
libtpu: 0.0.40
codegen_flags: <defaults>
</compile_context>

<pallas_src>
import functools

import jax
import jax.numpy as jnp
from jax.experimental import pallas as pl
from jax.experimental.pallas import tpu as pltpu


BN_EPS = 1e-5


def _silu(v):
    return v * jax.nn.sigmoid(v)


def _bn_silu(v, g, b, inv_n):
    """Training-mode BatchNorm (biased variance over all pixels) fused with SiLU.

    v: (channels, pixels); g, b: (channels, 1).
    Single reduction pass: var = E[v^2] - E[v]^2, folded into one per-channel
    scale/shift applied as v*scale + shift.
    """
    s = jnp.sum(v, axis=1, keepdims=True)
    ss = jnp.sum(v * v, axis=1, keepdims=True)
    mu = s * inv_n
    var = ss * inv_n - mu * mu
    scale = g * jax.lax.rsqrt(var + BN_EPS)
    shift = b - mu * scale
    return _silu(v * scale + shift)


def _avg_pool_3x3(x, m_l, m_r, m_u, m_d, width, nhw):
    """3x3 average pool (stride 1, pad 1, count_include_pad=True) on (ch, N*H*W).

    Pixels are flattened n-major, then h, then w. Separable shifted sums via
    static lane rolls (XLU); masks zero contributions that would wrap across a
    row / image boundary (i.e. emulate zero padding). Always divide by 9.
    """
    # 3-tap along W: neighbours at flattened index i-1 / i+1.
    row = (x
           + pltpu.roll(x, shift=1, axis=1) * m_l          # x[i-1], valid if w>0
           + pltpu.roll(x, shift=nhw - 1, axis=1) * m_r)   # x[i+1], valid if w<W-1
    # 3-tap along H: neighbours at flattened index i-W / i+W.
    out = (row
           + pltpu.roll(row, shift=width, axis=1) * m_u        # row[i-W], valid if h>0
           + pltpu.roll(row, shift=nhw - width, axis=1) * m_d)  # row[i+W], valid if h<H-1
    return out * (1.0 / 9.0)


def lm_kernel(x_ref, ml_ref, mr_ref, mu_ref, md_ref,
              w1_ref, w2_ref, g1_ref, b1_ref, g2_ref, b2_ref, g3_ref, b3_ref,
              o_ref, act_ref, *, width, nhw):
    """One CPC block per grid step; activation stays resident in VMEM."""
    layer = pl.program_id(0)

    @pl.when(layer == 0)
    def _():
        act_ref[...] = x_ref[...]

    x = act_ref[...]                       # (C, NHW) current block input
    m_l = ml_ref[...]
    m_r = mr_ref[...]
    m_u = mu_ref[...]
    m_d = md_ref[...]
    inv_n = 1.0 / nhw

    dot = functools.partial(jnp.dot, preferred_element_type=jnp.float32,
                            precision=jax.lax.Precision.HIGHEST)

    # Conv1 (1x1, no bias) -> BN1 -> SiLU
    x1 = dot(w1_ref[...], x)               # (E, NHW)
    x3 = _bn_silu(x1, g1_ref[...], b1_ref[...], inv_n)

    # AvgPool2d(3, stride 1, pad 1, count_include_pad=True) via shifted sums
    x4 = _avg_pool_3x3(x3, m_l, m_r, m_u, m_d, width, nhw)

    # BN2 -> SiLU, residual with x3
    x6 = _bn_silu(x4, g2_ref[...], b2_ref[...], inv_n) + x3

    # Conv2 (1x1, no bias) -> BN3 -> SiLU, residual with the block input
    x7 = dot(w2_ref[...], x6)              # (C, NHW)
    x9 = _bn_silu(x7, g3_ref[...], b3_ref[...], inv_n) + x

    act_ref[...] = x9

    @pl.when(layer == pl.num_programs(0) - 1)
    def _():
        o_ref[...] = x9


def lm_forward(x_nchw, params):
    n, c, h, w = x_nchw.shape
    nhw = n * h * w
    e = params[0]["w1"].shape[0]
    r = len(params)

    # NCHW -> (C, N*H*W): channel-on-sublane, pixel-on-lane.
    x2d = jnp.transpose(x_nchw, (1, 0, 2, 3)).reshape(c, nhw)

    # Zero-padding masks for the 3x3 pool (valid-neighbour indicators), (1, NHW).
    idx = jnp.arange(nhw, dtype=jnp.int32)
    wi = idx % w
    hi = (idx // w) % h
    m_l = (wi > 0).astype(jnp.float32).reshape(1, nhw)
    m_r = (wi < w - 1).astype(jnp.float32).reshape(1, nhw)
    m_u = (hi > 0).astype(jnp.float32).reshape(1, nhw)
    m_d = (hi < h - 1).astype(jnp.float32).reshape(1, nhw)

    # Stack per-layer parameters along a leading layer axis for the fused grid.
    w1 = jnp.stack([p["w1"] for p in params])   # (R, E, C)
    w2 = jnp.stack([p["w2"] for p in params])   # (R, C, E)
    g1 = jnp.stack([p["g1"] for p in params])   # (R, E, 1)
    b1 = jnp.stack([p["b1"] for p in params])
    g2 = jnp.stack([p["g2"] for p in params])
    b2 = jnp.stack([p["b2"] for p in params])
    g3 = jnp.stack([p["g3"] for p in params])   # (R, C, 1)
    b3 = jnp.stack([p["b3"] for p in params])

    def full(shape):
        return pl.BlockSpec(shape, lambda l: (0, 0))

    def per_layer(shape):
        return pl.BlockSpec((None,) + shape, lambda l: (l, 0, 0))

    out2d = pl.pallas_call(
        functools.partial(lm_kernel, width=w, nhw=nhw),
        out_shape=jax.ShapeDtypeStruct((c, nhw), jnp.float32),
        grid_spec=pltpu.PrefetchScalarGridSpec(
            num_scalar_prefetch=0,
            grid=(r,),
            in_specs=[
                full((c, nhw)),          # x (block input, used at layer 0)
                full((1, nhw)),          # m_l
                full((1, nhw)),          # m_r
                full((1, nhw)),          # m_u
                full((1, nhw)),          # m_d
                per_layer((e, c)),       # w1
                per_layer((c, e)),       # w2
                per_layer((e, 1)),       # g1
                per_layer((e, 1)),       # b1
                per_layer((e, 1)),       # g2
                per_layer((e, 1)),       # b2
                per_layer((c, 1)),       # g3
                per_layer((c, 1)),       # b3
            ],
            out_specs=pl.BlockSpec((c, nhw), lambda l: (0, 0)),
            scratch_shapes=[pltpu.VMEM((c, nhw), jnp.float32)],
        ),
        compiler_params=pltpu.CompilerParams(
            dimension_semantics=("arbitrary",)),
    )(x2d, m_l, m_r, m_u, m_d, w1, w2, g1, b1, g2, b2, g3, b3)

    return jnp.transpose(out2d.reshape(c, n, h, w), (1, 0, 2, 3))


def init_params(key, dim, expand_ratio, repeats):
    e = expand_ratio * dim
    params = []
    for _ in range(repeats):
        key, *ks = jax.random.split(key, 9)
        params.append(dict(
            # Conv2d weights (out, in, 1, 1) stored as (out, in) matrices.
            w1=jax.random.normal(ks[0], (e, dim), jnp.float32) / jnp.sqrt(dim),
            w2=jax.random.normal(ks[1], (dim, e), jnp.float32) / jnp.sqrt(e),
            g1=1.0 + 0.1 * jax.random.normal(ks[2], (e, 1), jnp.float32),
            b1=0.1 * jax.random.normal(ks[3], (e, 1), jnp.float32),
            g2=1.0 + 0.1 * jax.random.normal(ks[4], (e, 1), jnp.float32),
            b2=0.1 * jax.random.normal(ks[5], (e, 1), jnp.float32),
            g3=1.0 + 0.1 * jax.random.normal(ks[6], (dim, 1), jnp.float32),
            b3=0.1 * jax.random.normal(ks[7], (dim, 1), jnp.float32),
        ))
    return params


# ---------------- pure-JAX reference (for sanity checking) ----------------
def _ref_cpc(x_nchw, p):
    n, c, h, w = x_nchw.shape
    x2d = jnp.transpose(x_nchw, (0, 2, 3, 1)).reshape(n * h * w, c)

    def bn(v, g, b):
        mu = jnp.mean(v, axis=0, keepdims=True)
        var = jnp.mean(jnp.square(v - mu), axis=0, keepdims=True)
        return (v - mu) / jnp.sqrt(var + BN_EPS) * g.reshape(1, -1) + b.reshape(1, -1)

    dot = functools.partial(jnp.dot, precision=jax.lax.Precision.HIGHEST)
    x1 = dot(x2d, p["w1"].T)
    x3 = _silu(bn(x1, p["g1"], p["b1"]))
    e = x3.shape[1]
    x3_4d = x3.reshape(n, h, w, e)
    padded = jnp.pad(x3_4d, ((0, 0), (1, 1), (1, 1), (0, 0)))
    pooled = sum(padded[:, dh:dh + h, dw:dw + w, :]
                 for dh in range(3) for dw in range(3)) / 9.0
    x4 = pooled.reshape(n * h * w, e)
    x6 = _silu(bn(x4, p["g2"], p["b2"])) + x3
    x7 = dot(x6, p["w2"].T)
    x9 = _silu(bn(x7, p["g3"], p["b3"])) + x2d
    return jnp.transpose(x9.reshape(n, h, w, c), (0, 3, 1, 2))


def _ref_lm(x, params):
    for p in params:
        x = _ref_cpc(x, p)
    return x


if __name__ == "__main__":
    key = jax.random.PRNGKey(0)
    kx, kp = jax.random.split(key)

    N, dim, H, W = 2, 8, 16, 16
    expand_ratio, repeats = 4, 2

    x = jax.random.normal(kx, (N, dim, H, W), jnp.float32)
    params = init_params(kp, dim, expand_ratio, repeats)

    out = jax.block_until_ready(lm_forward(x, params))
    assert out.shape == x.shape and out.dtype == jnp.float32

    ref = jax.block_until_ready(_ref_lm(x, params))
    assert jnp.allclose(out, ref, rtol=1e-3, atol=1e-3), "mismatch vs JAX reference"

    print("KERNEL_OK")
</pallas_src>

<mosaic_0001>
module attributes {stable_mosaic.version = 11 : i64} {
  func.func @lm_kernel(%arg0: i32, %arg1: memref<8x512xf32, #tpu.memory_space<vmem>>, %arg2: memref<1x512xf32, #tpu.memory_space<vmem>>, %arg3: memref<1x512xf32, #tpu.memory_space<vmem>>, %arg4: memref<1x512xf32, #tpu.memory_space<vmem>>, %arg5: memref<1x512xf32, #tpu.memory_space<vmem>>, %arg6: memref<1x32x8xf32, #tpu.memory_space<vmem>>, %arg7: memref<1x8x32xf32, #tpu.memory_space<vmem>>, %arg8: memref<1x32x1xf32, #tpu.memory_space<vmem>>, %arg9: memref<1x32x1xf32, #tpu.memory_space<vmem>>, %arg10: memref<1x32x1xf32, #tpu.memory_space<vmem>>, %arg11: memref<1x32x1xf32, #tpu.memory_space<vmem>>, %arg12: memref<1x8x1xf32, #tpu.memory_space<vmem>>, %arg13: memref<1x8x1xf32, #tpu.memory_space<vmem>>, %arg14: memref<8x512xf32, #tpu.memory_space<vmem>>, %arg15: memref<8x512xf32, #tpu.memory_space<vmem>>) attributes {dimension_semantics = [#tpu.dimension_semantics<arbitrary>], iteration_bounds = array<i64: 2>, scalar_prefetch = 0 : i64, scratch_operands = 1 : i64, tpu.core_type = #tpu.core_type<tc>, window_params = [{pipeline_mode = #tpu.pipeline_mode<synchronous>, transform_indices = @transform_0, window_bounds = array<i64: 8, 512>}, {pipeline_mode = #tpu.pipeline_mode<synchronous>, transform_indices = @transform_1, window_bounds = array<i64: 1, 512>}, {pipeline_mode = #tpu.pipeline_mode<synchronous>, transform_indices = @transform_2, window_bounds = array<i64: 1, 512>}, {pipeline_mode = #tpu.pipeline_mode<synchronous>, transform_indices = @transform_3, window_bounds = array<i64: 1, 512>}, {pipeline_mode = #tpu.pipeline_mode<synchronous>, transform_indices = @transform_4, window_bounds = array<i64: 1, 512>}, {transform_indices = @transform_5, window_bounds = array<i64: 1, 32, 8>}, {transform_indices = @transform_6, window_bounds = array<i64: 1, 8, 32>}, {transform_indices = @transform_7, window_bounds = array<i64: 1, 32, 1>}, {transform_indices = @transform_8, window_bounds = array<i64: 1, 32, 1>}, {transform_indices = @transform_9, window_bounds = array<i64: 1, 32, 1>}, {transform_indices = @transform_10, window_bounds = array<i64: 1, 32, 1>}, {transform_indices = @transform_11, window_bounds = array<i64: 1, 8, 1>}, {transform_indices = @transform_12, window_bounds = array<i64: 1, 8, 1>}, {pipeline_mode = #tpu.pipeline_mode<synchronous>, transform_indices = @transform_13, window_bounds = array<i64: 8, 512>}]} {
    %c0_i32 = arith.constant 0 : i32
    %0 = arith.cmpi eq, %arg0, %c0_i32 : i32
    %1 = arith.extui %0 : i1 to i32
    %c0_i32_0 = arith.constant 0 : i32
    %2 = arith.cmpi ne, %1, %c0_i32_0 : i32
    scf.if %2 {
      %c0_58 = arith.constant 0 : index
      %c0_59 = arith.constant 0 : index
      %131 = vector.load %arg1[%c0_58, %c0_59] : memref<8x512xf32, #tpu.memory_space<vmem>>, vector<8x512xf32>
      %c0_60 = arith.constant 0 : index
      %c0_61 = arith.constant 0 : index
      %132 = vector.load %arg15[%c0_60, %c0_61] : memref<8x512xf32, #tpu.memory_space<vmem>>, vector<8x512xf32>
      tpu.vector_store %arg15[%c0_60, %c0_61], %131 {strides = array<i32>} : memref<8x512xf32, #tpu.memory_space<vmem>>, vector<8x512xf32>,
    } else {
    }
    %c0 = arith.constant 0 : index
    %c0_1 = arith.constant 0 : index
    %3 = vector.load %arg15[%c0, %c0_1] : memref<8x512xf32, #tpu.memory_space<vmem>>, vector<8x512xf32>
    %c0_2 = arith.constant 0 : index
    %c0_3 = arith.constant 0 : index
    %4 = vector.load %arg2[%c0_2, %c0_3] : memref<1x512xf32, #tpu.memory_space<vmem>>, vector<1x512xf32>
    %c0_4 = arith.constant 0 : index
    %c0_5 = arith.constant 0 : index
    %5 = vector.load %arg3[%c0_4, %c0_5] : memref<1x512xf32, #tpu.memory_space<vmem>>, vector<1x512xf32>
    %c0_6 = arith.constant 0 : index
    %c0_7 = arith.constant 0 : index
    %6 = vector.load %arg4[%c0_6, %c0_7] : memref<1x512xf32, #tpu.memory_space<vmem>>, vector<1x512xf32>
    %c0_8 = arith.constant 0 : index
    %c0_9 = arith.constant 0 : index
    %7 = vector.load %arg5[%c0_8, %c0_9] : memref<1x512xf32, #tpu.memory_space<vmem>>, vector<1x512xf32>
    %c0_10 = arith.constant 0 : index
    %c0_11 = arith.constant 0 : index
    %c0_12 = arith.constant 0 : index
    %8 = vector.load %arg6[%c0_10, %c0_11, %c0_12] : memref<1x32x8xf32, #tpu.memory_space<vmem>>, vector<1x32x8xf32>
    %9 = vector.shape_cast %8 : vector<1x32x8xf32> to vector<32x8xf32>
    %cst = arith.constant dense<0.000000e+00> : vector<32x512xf32>
    %10 = tpu.matmul %9, %3, %cst {dimension_numbers = #tpu.dot_dimension_numbers<[1], [0], [0], [1], [0, 0, 1, 1], [], []>, precision = #tpu.contract_precision<fp32>} : vector<32x8xf32>, vector<8x512xf32>, vector<32x512xf32> -> vector<32x512xf32>
    %c0_13 = arith.constant 0 : index
    %c0_14 = arith.constant 0 : index
    %c0_15 = arith.constant 0 : index
    %11 = vector.load %arg8[%c0_13, %c0_14, %c0_15] : memref<1x32x1xf32, #tpu.memory_space<vmem>>, vector<1x32x1xf32>
    %12 = vector.shape_cast %11 : vector<1x32x1xf32> to vector<32x1xf32>
    %c0_16 = arith.constant 0 : index
    %c0_17 = arith.constant 0 : index
    %c0_18 = arith.constant 0 : index
    %13 = vector.load %arg9[%c0_16, %c0_17, %c0_18] : memref<1x32x1xf32, #tpu.memory_space<vmem>>, vector<1x32x1xf32>
    %14 = vector.shape_cast %13 : vector<1x32x1xf32> to vector<32x1xf32>
    %cst_19 = arith.constant dense<0.000000e+00> : vector<32xf32>
    %15 = vector.multi_reduction <add>, %10, %cst_19 [1] : vector<32x512xf32> to vector<32xf32>
    %16 = vector.shape_cast %15 : vector<32xf32> to vector<32x1xf32>
    %17 = arith.mulf %10, %10 : vector<32x512xf32>
    %cst_20 = arith.constant dense<0.000000e+00> : vector<32xf32>
    %18 = vector.multi_reduction <add>, %17, %cst_20 [1] : vector<32x512xf32> to vector<32xf32>
    %19 = vector.shape_cast %18 : vector<32xf32> to vector<32x1xf32>
    %cst_21 = arith.constant 0.001953125 : f32
    %20 = vector.broadcast %cst_21 : f32 to vector<32x1xf32>
    %21 = arith.mulf %16, %20 : vector<32x1xf32>
    %cst_22 = arith.constant 0.001953125 : f32
    %22 = vector.broadcast %cst_22 : f32 to vector<32x1xf32>
    %23 = arith.mulf %19, %22 : vector<32x1xf32>
    %24 = arith.mulf %21, %21 : vector<32x1xf32>
    %25 = arith.subf %23, %24 : vector<32x1xf32>
    %cst_23 = arith.constant 9.99999974E-6 : f32
    %26 = vector.broadcast %cst_23 : f32 to vector<32x1xf32>
    %27 = arith.addf %25, %26 : vector<32x1xf32>
    %28 = math.rsqrt %27 : vector<32x1xf32>
    %29 = arith.mulf %12, %28 : vector<32x1xf32>
    %30 = arith.mulf %21, %29 : vector<32x1xf32>
    %31 = arith.subf %14, %30 : vector<32x1xf32>
    %32 = vector.broadcast %29 : vector<32x1xf32> to vector<32x512xf32>
    %33 = arith.mulf %10, %32 : vector<32x512xf32>
    %34 = vector.broadcast %31 : vector<32x1xf32> to vector<32x512xf32>
    %35 = arith.addf %33, %34 : vector<32x512xf32>
    %36 = arith.negf %35 : vector<32x512xf32>
    %37 = math.exp %36 : vector<32x512xf32>
    %cst_24 = arith.constant 1.000000e+00 : f32
    %38 = vector.broadcast %cst_24 : f32 to vector<32x512xf32>
    %39 = arith.addf %38, %37 : vector<32x512xf32>
    %40 = arith.divf %38, %39 : vector<32x512xf32>
    %41 = arith.mulf %35, %40 : vector<32x512xf32>
    %c1_i32 = arith.constant 1 : i32
    %42 = tpu.dynamic_rotate %41 by %c1_i32 dim 1 : vector<32x512xf32>, i32 -> vector<32x512xf32>
    %43 = vector.broadcast %4 : vector<1x512xf32> to vector<32x512xf32>
    %44 = arith.mulf %42, %43 : vector<32x512xf32>
    %45 = arith.addf %41, %44 : vector<32x512xf32>
    %c511_i32 = arith.constant 511 : i32
    %46 = tpu.dynamic_rotate %41 by %c511_i32 dim 1 : vector<32x512xf32>, i32 -> vector<32x512xf32>
    %47 = vector.broadcast %5 : vector<1x512xf32> to vector<32x512xf32>
    %48 = arith.mulf %46, %47 : vector<32x512xf32>
    %49 = arith.addf %45, %48 : vector<32x512xf32>
    %c16_i32 = arith.constant 16 : i32
    %50 = tpu.dynamic_rotate %49 by %c16_i32 dim 1 : vector<32x512xf32>, i32 -> vector<32x512xf32>
    %51 = vector.broadcast %6 : vector<1x512xf32> to vector<32x512xf32>
    %52 = arith.mulf %50, %51 : vector<32x512xf32>
    %53 = arith.addf %49, %52 : vector<32x512xf32>
    %c496_i32 = arith.constant 496 : i32
    %54 = tpu.dynamic_rotate %49 by %c496_i32 dim 1 : vector<32x512xf32>, i32 -> vector<32x512xf32>
    %55 = vector.broadcast %7 : vector<1x512xf32> to vector<32x512xf32>
    %56 = arith.mulf %54, %55 : vector<32x512xf32>
    %57 = arith.addf %53, %56 : vector<32x512xf32>
    %cst_25 = arith.constant 0.111111112 : f32
    %58 = vector.broadcast %cst_25 : f32 to vector<32x512xf32>
    %59 = arith.mulf %57, %58 : vector<32x512xf32>
    %c0_26 = arith.constant 0 : index
    %c0_27 = arith.constant 0 : index
    %c0_28 = arith.constant 0 : index
    %60 = vector.load %arg10[%c0_26, %c0_27, %c0_28] : memref<1x32x1xf32, #tpu.memory_space<vmem>>, vector<1x32x1xf32>
    %61 = vector.shape_cast %60 : vector<1x32x1xf32> to vector<32x1xf32>
    %c0_29 = arith.constant 0 : index
    %c0_30 = arith.constant 0 : index
    %c0_31 = arith.constant 0 : index
    %62 = vector.load %arg11[%c0_29, %c0_30, %c0_31] : memref<1x32x1xf32, #tpu.memory_space<vmem>>, vector<1x32x1xf32>
    %63 = vector.shape_cast %62 : vector<1x32x1xf32> to vector<32x1xf32>
    %cst_32 = arith.constant dense<0.000000e+00> : vector<32xf32>
    %64 = vector.multi_reduction <add>, %59, %cst_32 [1] : vector<32x512xf32> to vector<32xf32>
    %65 = vector.shape_cast %64 : vector<32xf32> to vector<32x1xf32>
    %66 = arith.mulf %59, %59 : vector<32x512xf32>
    %cst_33 = arith.constant dense<0.000000e+00> : vector<32xf32>
    %67 = vector.multi_reduction <add>, %66, %cst_33 [1] : vector<32x512xf32> to vector<32xf32>
    %68 = vector.shape_cast %67 : vector<32xf32> to vector<32x1xf32>
    %cst_34 = arith.constant 0.001953125 : f32
    %69 = vector.broadcast %cst_34 : f32 to vector<32x1xf32>
    %70 = arith.mulf %65, %69 : vector<32x1xf32>
    %cst_35 = arith.constant 0.001953125 : f32
    %71 = vector.broadcast %cst_35 : f32 to vector<32x1xf32>
    %72 = arith.mulf %68, %71 : vector<32x1xf32>
    %73 = arith.mulf %70, %70 : vector<32x1xf32>
    %74 = arith.subf %72, %73 : vector<32x1xf32>
    %cst_36 = arith.constant 9.99999974E-6 : f32
    %75 = vector.broadcast %cst_36 : f32 to vector<32x1xf32>
    %76 = arith.addf %74, %75 : vector<32x1xf32>
    %77 = math.rsqrt %76 : vector<32x1xf32>
    %78 = arith.mulf %61, %77 : vector<32x1xf32>
    %79 = arith.mulf %70, %78 : vector<32x1xf32>
    %80 = arith.subf %63, %79 : vector<32x1xf32>
    %81 = vector.broadcast %78 : vector<32x1xf32> to vector<32x512xf32>
    %82 = arith.mulf %59, %81 : vector<32x512xf32>
    %83 = vector.broadcast %80 : vector<32x1xf32> to vector<32x512xf32>
    %84 = arith.addf %82, %83 : vector<32x512xf32>
    %85 = arith.negf %84 : vector<32x512xf32>
    %86 = math.exp %85 : vector<32x512xf32>
    %cst_37 = arith.constant 1.000000e+00 : f32
    %87 = vector.broadcast %cst_37 : f32 to vector<32x512xf32>
    %88 = arith.addf %87, %86 : vector<32x512xf32>
    %89 = arith.divf %87, %88 : vector<32x512xf32>
    %90 = arith.mulf %84, %89 : vector<32x512xf32>
    %91 = arith.addf %90, %41 : vector<32x512xf32>
    %c0_38 = arith.constant 0 : index
    %c0_39 = arith.constant 0 : index
    %c0_40 = arith.constant 0 : index
    %92 = vector.load %arg7[%c0_38, %c0_39, %c0_40] : memref<1x8x32xf32, #tpu.memory_space<vmem>>, vector<1x8x32xf32>
    %93 = vector.shape_cast %92 : vector<1x8x32xf32> to vector<8x32xf32>
    %cst_41 = arith.constant dense<0.000000e+00> : vector<8x512xf32>
    %94 = tpu.matmul %93, %91, %cst_41 {dimension_numbers = #tpu.dot_dimension_numbers<[1], [0], [0], [1], [0, 0, 1, 1], [], []>, precision = #tpu.contract_precision<fp32>} : vector<8x32xf32>, vector<32x512xf32>, vector<8x512xf32> -> vector<8x512xf32>
    %c0_42 = arith.constant 0 : index
    %c0_43 = arith.constant 0 : index
    %c0_44 = arith.constant 0 : index
    %95 = vector.load %arg12[%c0_42, %c0_43, %c0_44] : memref<1x8x1xf32, #tpu.memory_space<vmem>>, vector<1x8x1xf32>
    %96 = vector.shape_cast %95 : vector<1x8x1xf32> to vector<8x1xf32>
    %c0_45 = arith.constant 0 : index
    %c0_46 = arith.constant 0 : index
    %c0_47 = arith.constant 0 : index
    %97 = vector.load %arg13[%c0_45, %c0_46, %c0_47] : memref<1x8x1xf32, #tpu.memory_space<vmem>>, vector<1x8x1xf32>
    %98 = vector.shape_cast %97 : vector<1x8x1xf32> to vector<8x1xf32>
    %cst_48 = arith.constant dense<0.000000e+00> : vector<8xf32>
    %99 = vector.multi_reduction <add>, %94, %cst_48 [1] : vector<8x512xf32> to vector<8xf32>
    %100 = vector.shape_cast %99 : vector<8xf32> to vector<8x1xf32>
    %101 = arith.mulf %94, %94 : vector<8x512xf32>
    %cst_49 = arith.constant dense<0.000000e+00> : vector<8xf32>
    %102 = vector.multi_reduction <add>, %101, %cst_49 [1] : vector<8x512xf32> to vector<8xf32>
    %103 = vector.shape_cast %102 : vector<8xf32> to vector<8x1xf32>
    %cst_50 = arith.constant 0.001953125 : f32
    %104 = vector.broadcast %cst_50 : f32 to vector<8x1xf32>
    %105 = arith.mulf %100, %104 : vector<8x1xf32>
    %cst_51 = arith.constant 0.001953125 : f32
    %106 = vector.broadcast %cst_51 : f32 to vector<8x1xf32>
    %107 = arith.mulf %103, %106 : vector<8x1xf32>
    %108 = arith.mulf %105, %105 : vector<8x1xf32>
    %109 = arith.subf %107, %108 : vector<8x1xf32>
    %cst_52 = arith.constant 9.99999974E-6 : f32
    %110 = vector.broadcast %cst_52 : f32 to vector<8x1xf32>
    %111 = arith.addf %109, %110 : vector<8x1xf32>
    %112 = math.rsqrt %111 : vector<8x1xf32>
    %113 = arith.mulf %96, %112 : vector<8x1xf32>
    %114 = arith.mulf %105, %113 : vector<8x1xf32>
    %115 = arith.subf %98, %114 : vector<8x1xf32>
    %116 = vector.broadcast %113 : vector<8x1xf32> to vector<8x512xf32>
    %117 = arith.mulf %94, %116 : vector<8x512xf32>
    %118 = vector.broadcast %115 : vector<8x1xf32> to vector<8x512xf32>
    %119 = arith.addf %117, %118 : vector<8x512xf32>
    %120 = arith.negf %119 : vector<8x512xf32>
    %121 = math.exp %120 : vector<8x512xf32>
    %cst_53 = arith.constant 1.000000e+00 : f32
    %122 = vector.broadcast %cst_53 : f32 to vector<8x512xf32>
    %123 = arith.addf %122, %121 : vector<8x512xf32>
    %124 = arith.divf %122, %123 : vector<8x512xf32>
    %125 = arith.mulf %119, %124 : vector<8x512xf32>
    %126 = arith.addf %125, %3 : vector<8x512xf32>
    %c0_54 = arith.constant 0 : index
    %c0_55 = arith.constant 0 : index
    %127 = vector.load %arg15[%c0_54, %c0_55] : memref<8x512xf32, #tpu.memory_space<vmem>>, vector<8x512xf32>
    tpu.vector_store %arg15[%c0_54, %c0_55], %126 {strides = array<i32>} : memref<8x512xf32, #tpu.memory_space<vmem>>, vector<8x512xf32>,
    %c1_i32_56 = arith.constant 1 : i32
    %128 = arith.cmpi eq, %arg0, %c1_i32_56 : i32
    %129 = arith.extui %128 : i1 to i32
    %c0_i32_57 = arith.constant 0 : i32
    %130 = arith.cmpi ne, %129, %c0_i32_57 : i32
    scf.if %130 {
      %c0_58 = arith.constant 0 : index
      %c0_59 = arith.constant 0 : index
      %131 = vector.load %arg14[%c0_58, %c0_59] : memref<8x512xf32, #tpu.memory_space<vmem>>, vector<8x512xf32>
      tpu.vector_store %arg14[%c0_58, %c0_59], %126 {strides = array<i32>} : memref<8x512xf32, #tpu.memory_space<vmem>>, vector<8x512xf32>,
    } else {
    }
    return
  }
  func.func @transform_0(%arg0: i32) -> (i32, i32) {
    %c0_i32 = arith.constant 0 : i32
    %c0_i32_0 = arith.constant 0 : i32
    %c0_i32_1 = arith.constant 0 : i32
    return %c0_i32, %c0_i32_0 : i32, i32
  }
  func.func @transform_1(%arg0: i32) -> (i32, i32) {
    %c0_i32 = arith.constant 0 : i32
    %c0_i32_0 = arith.constant 0 : i32
    %c0_i32_1 = arith.constant 0 : i32
    return %c0_i32, %c0_i32_0 : i32, i32
  }
  func.func @transform_2(%arg0: i32) -> (i32, i32) {
    %c0_i32 = arith.constant 0 : i32
    %c0_i32_0 = arith.constant 0 : i32
    %c0_i32_1 = arith.constant 0 : i32
    return %c0_i32, %c0_i32_0 : i32, i32
  }
  func.func @transform_3(%arg0: i32) -> (i32, i32) {
    %c0_i32 = arith.constant 0 : i32
    %c0_i32_0 = arith.constant 0 : i32
    %c0_i32_1 = arith.constant 0 : i32
    return %c0_i32, %c0_i32_0 : i32, i32
  }
  func.func @transform_4(%arg0: i32) -> (i32, i32) {
    %c0_i32 = arith.constant 0 : i32
    %c0_i32_0 = arith.constant 0 : i32
    %c0_i32_1 = arith.constant 0 : i32
    return %c0_i32, %c0_i32_0 : i32, i32
  }
  func.func @transform_5(%arg0: i32) -> (i32, i32, i32) {
    %c0_i32 = arith.constant 0 : i32
    %c0_i32_0 = arith.constant 0 : i32
    %c0_i32_1 = arith.constant 0 : i32
    return %arg0, %c0_i32, %c0_i32_0 : i32, i32, i32
  }
  func.func @transform_6(%arg0: i32) -> (i32, i32, i32) {
    %c0_i32 = arith.constant 0 : i32
    %c0_i32_0 = arith.constant 0 : i32
    %c0_i32_1 = arith.constant 0 : i32
    return %arg0, %c0_i32, %c0_i32_0 : i32, i32, i32
  }
  func.func @transform_7(%arg0: i32) -> (i32, i32, i32) {
    %c0_i32 = arith.constant 0 : i32
    %c0_i32_0 = arith.constant 0 : i32
    %c0_i32_1 = arith.constant 0 : i32
    return %arg0, %c0_i32, %c0_i32_0 : i32, i32, i32
  }
  func.func @transform_8(%arg0: i32) -> (i32, i32, i32) {
    %c0_i32 = arith.constant 0 : i32
    %c0_i32_0 = arith.constant 0 : i32
    %c0_i32_1 = arith.constant 0 : i32
    return %arg0, %c0_i32, %c0_i32_0 : i32, i32, i32
  }
  func.func @transform_9(%arg0: i32) -> (i32, i32, i32) {
    %c0_i32 = arith.constant 0 : i32
    %c0_i32_0 = arith.constant 0 : i32
    %c0_i32_1 = arith.constant 0 : i32
    return %arg0, %c0_i32, %c0_i32_0 : i32, i32, i32
  }
  func.func @transform_10(%arg0: i32) -> (i32, i32, i32) {
    %c0_i32 = arith.constant 0 : i32
    %c0_i32_0 = arith.constant 0 : i32
    %c0_i32_1 = arith.constant 0 : i32
    return %arg0, %c0_i32, %c0_i32_0 : i32, i32, i32
  }
  func.func @transform_11(%arg0: i32) -> (i32, i32, i32) {
    %c0_i32 = arith.constant 0 : i32
    %c0_i32_0 = arith.constant 0 : i32
    %c0_i32_1 = arith.constant 0 : i32
    return %arg0, %c0_i32, %c0_i32_0 : i32, i32, i32
  }
  func.func @transform_12(%arg0: i32) -> (i32, i32, i32) {
    %c0_i32 = arith.constant 0 : i32
    %c0_i32_0 = arith.constant 0 : i32
    %c0_i32_1 = arith.constant 0 : i32
    return %arg0, %c0_i32, %c0_i32_0 : i32, i32, i32
  }
  func.func @transform_13(%arg0: i32) -> (i32, i32) {
    %c0_i32 = arith.constant 0 : i32
    %c0_i32_0 = arith.constant 0 : i32
    %c0_i32_1 = arith.constant 0 : i32
    return %c0_i32, %c0_i32_0 : i32, i32
  }
}

</mosaic_0001>

<bundles_post_ra>
// kernel: tpu_custom_call.1
= control target key start
LH: loop header
LB: loop body
LE: loop exit
PB: predicated region body
PF: predicated region fallthrough
CT: control target
= control target key end

     0   :  { %s6106_s0 = inlined_call_operand.vmem [shape: f32[8,512], index: 0, kind: input, shape index: {}]   ;;  %s6107_s1 = inlined_call_operand.vmem [shape: f32[1,512], index: 1, kind: input, shape index: {}]   ;;  %s6108_s2 = inlined_call_operand.vmem [shape: f32[1,512], index: 2, kind: input, shape index: {}]   ;;  %s6109_s3 = inlined_call_operand.vmem [shape: f32[1,512], index: 3, kind: input, shape index: {}]   ;;  %s6110_s4 = inlined_call_operand.vmem [shape: f32[1,512], index: 4, kind: input, shape index: {}]   ;;  %s6111_s5 = inlined_call_operand.vmem [shape: f32[2,32,8], index: 5, kind: input, shape index: {}]   ;;  %s6112_s6 = inlined_call_operand.vmem [shape: f32[2,8,32], index: 6, kind: input, shape index: {}]   ;;  %s6113_s7 = inlined_call_operand.vmem [shape: f32[2,32,1], index: 7, kind: input, shape index: {}]   ;;  %s6114_s8 = inlined_call_operand.vmem [shape: f32[2,32,1], index: 8, kind: input, shape index: {}]   ;;  %s6115_s9 = inlined_call_operand.vmem [shape: f32[2,32,1], index: 9, kind: input, shape index: {}]   ;;  %s6116_s10 = inlined_call_operand.vmem [shape: f32[2,32,1], index: 10, kind: input, shape index: {}]   ;;  %s6117_s11 = inlined_call_operand.vmem [shape: f32[2,8,1], index: 11, kind: input, shape index: {}]   ;;  %s6118_s12 = inlined_call_operand.vmem [shape: f32[2,8,1], index: 12, kind: input, shape index: {}]   ;;  %s6119_s13 = inlined_call_operand.hbm [shape: f32[8,512], index: 13, kind: output, shape index: {}]  }
   0x1   :  { %6128 = sst [smem:[#allocation10_spill]] %s6111_s5 }
   0x2   :  { %6129 = sst [smem:[#allocation11_spill]] %s6113_s7 }
   0x3   :  { %6130 = sst [smem:[#allocation12_spill]] %s6114_s8 }
   0x4   :  { %18 = vsyncpa [#allocation4], 0  ;;  %s4701_s25 = smov 0  }
   0x5 LB: > { %6131 = sst [smem:[#allocation6_spill]] %s4622_s25  ;;  %s4707_s26 = sadd.s32 4294967295, %s4622_s25   ;;  %s4622_s25 = sphi %s4701_s25, %s24_s25  }
   0x6   : > { %p4140_p0 = scmp.ge.s32.totalorder %s4622_s25, 1  ;;  %p450_p1 = scmp.lt.s32.totalorder %s4622_s25, 3 }
   0x8   : > { %p451_p2 = pnand %p4140_p0, %p450_p1 }
   0xa   : > { %454 = sbr.rel (%p451_p2) target bundleno = 1957 (0x7a5), region = 72 }
  0x11   : > { %p521_p3 = scmp.lt.s32.totalorder %s4707_s26, 1  ;;  %s6132_s5 = sld [smem:[#allocation10_spill]] }
  0x12   : > { %s6133_s7 = sld [smem:[#allocation11_spill]]  ;;  %s6134_s8 = sld [smem:[#allocation12_spill]] }
  0x13   : > { %s522_s27 = scalar_select %p521_p3, %s4707_s26, 1 }
  0x14   : > { %p4154_p4 = scmp.ne.s32.totalorder %s4707_s26, 0 }
  0x15   : > { %s4196_s28 = sshll.u32 %s522_s27, 5  ;;  %s4713_s29 = sshll.u32 %s522_s27, 3  ;;  %v562_v0 = vld [vmem:[%s6106_s0] sm:$0xff] (!%p4154_p4)  ;;  %v563_v1 = vld [vmem:[%s6106_s0 + $0x8] sm:$0xff] (!%p4154_p4)  ;;  %v564_v2 = vld [vmem:[%s6106_s0 + $0x10] sm:$0xff] (!%p4154_p4) }
  0x16   : > { %s4737_s14 = scalar_lea.vmem %s6115_s9, %s4196_s28  ;;  %s4742_s16 = scalar_lea.vmem %s6116_s10, %s4196_s28  ;;  %566 = vst [vmem:[#allocation2] sm:$0xff] (!%p4154_p4), %v562_v0  ;;  %567 = vst [vmem:[#allocation2 + $0x8] sm:$0xff] (!%p4154_p4), %v563_v1  ;;  %v565_v3 = vld [vmem:[%s6106_s0 + $0x18] sm:$0xff] (!%p4154_p4) }
  0x17   : > { %s4718_s15 = scalar_lea.vmem %s6132_s5, %s4196_s28  ;;  %s553_s19 = scalar_lea.vmem %s6117_s11, %s4713_s29  ;;  %568 = vst [vmem:[#allocation2 + $0x10] sm:$0xff] (!%p4154_p4), %v564_v2  ;;  %569 = vst [vmem:[#allocation2 + $0x18] sm:$0xff] (!%p4154_p4), %v565_v3 }
  0x18   : > { %s4727_s21 = scalar_lea.vmem %s6133_s7, %s4196_s28  ;;  %s4732_s24 = scalar_lea.vmem %s6134_s8, %s4196_s28 }
  0x19   : > { %s557_s22 = scalar_lea.vmem %s6118_s12, %s4713_s29  ;;  %561 = sbr.rel (%p4154_p4) target bundleno = 32 (0x20), region = 76 }
  0x20 PF: > { %v571_v4 = vld [vmem:[#allocation2 + $0x8] sm:$0xff]  ;;  %v573_v5 = vld [vmem:[#allocation2 + $0x18] sm:$0xff]  ;;  %v570_v6 = vld [vmem:[#allocation2] sm:$0xff]  ;;  %vm582_vm0 = vcmask 64512   ;;  %v6121_v10 = vmov 0.0   ;;  %s4626_s8 = smov 1   ;;  %s6138_s7 = scalar_lea.vmem %s6112_s6, %s4713_s29 }
  0x21   : > { %v4765_v7 = vand.u32 4294901760, %v571_v4  ;;  %v4767_v8 = vand.u32 4294901760, %v573_v5  ;;  %v4769_v9 = vand.u32 4294901760, %v570_v6  ;;  %661 = vmatprep.mubr.f32.mxu0 %v6121_v10  ;;  %v572_v11 = vld [vmem:[#allocation2 + $0x10] sm:$0xff]  ;;  %1273 = vmatprep.mubr.f32.mxu1 %v6121_v10  ;;  %v578_v12 = vld [vmem:[%s4718_s15] sm:$0xff]  ;;  %v579_v13 = vld [vmem:[%s4718_s15 + $0x8] sm:$0xff] }
  0x22   : > { %v4775_v14 = vand.u32 4294901760, %v572_v11  ;;  %v584_v15 = vsel %vm582_vm0, %v578_v12, 0  ;;  %v587_v16 = vsel %vm582_vm0, %v579_v13, 0  ;;  %v580_v17 = vld [vmem:[%s4718_s15 + $0x10] sm:$0xff]  ;;  %v581_v18 = vld [vmem:[%s4718_s15 + $0x18] sm:$0xff]  ;;  %s4627_s15 = smov 127  }
  0x23   : > { %596 = vmatprep.subr.mxu0 %v4765_v7  ;;  %1208 = vmatprep.subr.mxu1 %v4767_v8  ;;  %v4783_v19 = vand.u32 4294901760, %v584_v15  ;;  %v4785_v20 = vand.u32 4294901760, %v587_v16  ;;  %v4788_v21 = vsub.f32 %v571_v4, %v4765_v7  ;;  %v4791_v22 = vsub.f32 %v570_v6, %v4769_v9  ;;  %s4628_s20 = smov 16   ;;  %s4629_s23 = smov 112  }
  0x24   : > { %598 = vmatpush1.msra.mxu0 %v4769_v9  ;;  %1210 = vmatpush1.msra.mxu1 %v4775_v14  ;;  %v4796_v23 = vsub.f32 %v573_v5, %v4767_v8  ;;  %v590_v24 = vsel %vm582_vm0, %v580_v17, 0  ;;  %v4800_v25 = vsub.f32 %v572_v11, %v4775_v14  ;;  %v593_v26 = vsel %vm582_vm0, %v581_v18, 0  ;;  %p4191_p5 = scmp.ne.s32.totalorder %s4707_s26, 1 }
  0x25   : > { %v4804_v27 = vsub.f32 %v584_v15, %v4783_v19  ;;  %v4807_v28 = vsub.f32 %v587_v16, %v4785_v20  ;;  %v708_v29 = vand.u32 4294901760, %v4788_v21  ;;  %v714_v30 = vand.u32 4294901760, %v4791_v22 }
  0x26   : > { %v1320_v31 = vand.u32 4294901760, %v4796_v23  ;;  %v4812_v32 = vand.u32 4294901760, %v590_v24  ;;  %v1326_v33 = vand.u32 4294901760, %v4800_v25  ;;  %v4815_v34 = vand.u32 4294901760, %v593_v26 }
  0x27   : > { %v4818_v35 = vand.u32 4294901760, %v4804_v27  ;;  %v4821_v36 = vand.u32 4294901760, %v4807_v28  ;;  %v709_v37 = vsub.f32 %v4788_v21, %v708_v29  ;;  %v715_v38 = vsub.f32 %v4791_v22, %v714_v30 }
  0x28   : > { %v1321_v39 = vsub.f32 %v4796_v23, %v1320_v31  ;;  %v4833_v40 = vsub.f32 %v590_v24, %v4812_v32  ;;  %v1327_v41 = vsub.f32 %v4800_v25, %v1326_v33  ;;  %v4843_v45 = vsub.f32 %v593_v26, %v4815_v34 }
  0x29   : > { %v665_v42 = vsub.f32 %v4804_v27, %v4818_v35  ;;  %v676_v43 = vsub.f32 %v4807_v28, %v4821_v36  ;;  %v710_v44 = vand.u32 4294901760, %v709_v37  ;;  %v716_v49 = vand.u32 4294901760, %v715_v38 }
  0x2a   : > { %v1322_v46 = vand.u32 4294901760, %v1321_v39  ;;  %v4846_v47 = vand.u32 4294901760, %v4833_v40  ;;  %v1328_v50 = vand.u32 4294901760, %v1327_v41  ;;  %v4851_v53 = vand.u32 4294901760, %v4843_v45 }
  0x2b   : > { %v666_v48 = vand.u32 4294901760, %v665_v42  ;;  %711 = vmatprep.subr.mxu0 %v710_v44  ;;  %v677_v51 = vand.u32 4294901760, %v676_v43  ;;  %vm2830_vm5 = vcmask 261120  }
  0x2c   : > { %1323 = vmatprep.subr.mxu1 %v1322_v46  ;;  %v687_v52 = vsub.f32 %v4833_v40, %v4846_v47  ;;  %v698_v55 = vsub.f32 %v4843_v45, %v4851_v53 }
  0x2d   : > { %667 = vmatmul.mubr.f32.vlgmr.msra.gmra.mrb[0].mxu0 %v666_v48  ;;  %1279 = vmatmul.mubr.f32.vlgmr.msra.gmra.mrb[0].mxu1 %v666_v48 }
  0x2e   : > { %672 = vmatprep.mubr.f32.mxu0 %v6121_v10  ;;  %1284 = vmatprep.mubr.f32.mxu1 %v6121_v10  ;;  %v688_v54 = vand.u32 4294901760, %v687_v52  ;;  %v699_v56 = vand.u32 4294901760, %v698_v55 }
  0x2f   : > { %717 = vmatpush1.msra.mxu0 %v716_v49  ;;  %1329 = vmatpush1.msra.mxu1 %v1328_v50  ;;  %v4625_v50 = vmov 0  }
  0x30   : > { %811 = vmatprep.subr.mxu0 %v4788_v21  ;;  %1423 = vmatprep.subr.mxu1 %v4796_v23 }
  0x31   : > { %678 = vmatmul.mubr.f32.gmra.mrb[2].mxu0 %v677_v51  ;;  %1290 = vmatmul.mubr.f32.gmra.mrb[2].mxu1 %v677_v51 }
  0x32   : > { %683 = vmatprep.mubr.f32.mxu0 %v6121_v10  ;;  %1295 = vmatprep.mubr.f32.mxu1 %v6121_v10 }
  0x33   : > { %4418 = vset.pattern.permute.xlu0 %v4625_v50  ;;  %4419 = vset.pattern.permute.xlu1 %v4625_v50 }
  0x35   : > { %689 = vmatmul.mubr.f32.gmra.mrb[4].mxu0 %v688_v54  ;;  %1301 = vmatmul.mubr.f32.gmra.mrb[4].mxu1 %v688_v54 }
  0x36   : > { %694 = vmatprep.mubr.f32.mxu0 %v6121_v10  ;;  %1306 = vmatprep.mubr.f32.mxu1 %v6121_v10 }
  0x39   : > { %700 = vmatmul.mubr.f32.gmra.mrb[6].mxu0 %v699_v56  ;;  %1312 = vmatmul.mubr.f32.gmra.mrb[6].mxu1 %v699_v56 }
  0x3a   : > { %780 = vmatprep.mubr.f32.mxu0 %v6121_v10  ;;  %1392 = vmatprep.mubr.f32.mxu1 %v6121_v10 }
  0x3d   : > { %782 = vmatmul.mubr.f32.vlgmr.msra.gmra.mrb[0].mxu0 %v4783_v19  ;;  %1394 = vmatmul.mubr.f32.vlgmr.msra.gmra.mrb[0].mxu1 %v4783_v19 }
  0x3e   : > { %787 = vmatprep.mubr.f32.mxu0 %v6121_v10  ;;  %1399 = vmatprep.mubr.f32.mxu1 %v6121_v10 }
  0x3f   : > { %814 = vmatpush1.msra.mxu0 %v4791_v22  ;;  %1426 = vmatpush1.msra.mxu1 %v4800_v25 }
  0x40   : > { %911 = vmatprep.subr.mxu0 %v4765_v7  ;;  %1523 = vmatprep.subr.mxu1 %v4767_v8 }
  0x41   : > { %789 = vmatmul.mubr.f32.gmra.mrb[2].mxu0 %v4785_v20  ;;  %1401 = vmatmul.mubr.f32.gmra.mrb[2].mxu1 %v4785_v20 }
  0x42   : > { %794 = vmatprep.mubr.f32.mxu0 %v6121_v10  ;;  %1406 = vmatprep.mubr.f32.mxu1 %v6121_v10 }
  0x45   : > { %796 = vmatmul.mubr.f32.gmra.mrb[4].mxu0 %v4812_v32  ;;  %1408 = vmatmul.mubr.f32.gmra.mrb[4].mxu1 %v4812_v32 }
  0x46   : > { %801 = vmatprep.mubr.f32.mxu0 %v6121_v10  ;;  %1413 = vmatprep.mubr.f32.mxu1 %v6121_v10 }
  0x49   : > { %803 = vmatmul.mubr.f32.gmra.mrb[6].mxu0 %v4815_v34  ;;  %1415 = vmatmul.mubr.f32.gmra.mrb[6].mxu1 %v4815_v34 }
  0x4a   : > { %877 = vmatprep.mubr.f32.mxu0 %v6121_v10  ;;  %1489 = vmatprep.mubr.f32.mxu1 %v6121_v10 }
  0x4d   : > { %880 = vmatmul.mubr.f32.vlgmr.msra.gmra.mrb[0].mxu0 %v4804_v27  ;;  %1492 = vmatmul.mubr.f32.vlgmr.msra.gmra.mrb[0].mxu1 %v4804_v27 }
  0x4e   : > { %885 = vmatprep.mubr.f32.mxu0 %v6121_v10  ;;  %1497 = vmatprep.mubr.f32.mxu1 %v6121_v10 }
  0x4f   : > { %913 = vmatpush1.msra.mxu0 %v4769_v9  ;;  %1525 = vmatpush1.msra.mxu1 %v4775_v14 }
  0x50   : > { %1016 = vmatprep.subr.mxu0 %v708_v29  ;;  %1628 = vmatprep.subr.mxu1 %v1320_v31 }
  0x51   : > { %888 = vmatmul.mubr.f32.gmra.mrb[2].mxu0 %v4807_v28  ;;  %1500 = vmatmul.mubr.f32.gmra.mrb[2].mxu1 %v4807_v28 }
  0x52   : > { %893 = vmatprep.mubr.f32.mxu0 %v6121_v10  ;;  %1505 = vmatprep.mubr.f32.mxu1 %v6121_v10 }
  0x55   : > { %896 = vmatmul.mubr.f32.gmra.mrb[4].mxu0 %v4833_v40  ;;  %1508 = vmatmul.mubr.f32.gmra.mrb[4].mxu1 %v4833_v40 }
  0x56   : > { %901 = vmatprep.mubr.f32.mxu0 %v6121_v10  ;;  %1513 = vmatprep.mubr.f32.mxu1 %v6121_v10 }
  0x59   : > { %904 = vmatmul.mubr.f32.gmra.mrb[6].mxu0 %v4843_v45  ;;  %1516 = vmatmul.mubr.f32.gmra.mrb[6].mxu1 %v4843_v45 }
  0x5a   : > { %976 = vmatprep.mubr.f32.mxu0 %v6121_v10  ;;  %1588 = vmatprep.mubr.f32.mxu1 %v6121_v10 }
  0x5d   : > { %980 = vmatmul.mubr.f32.vlgmr.msra.gmra.mrb[0].mxu0 %v4818_v35  ;;  %1592 = vmatmul.mubr.f32.vlgmr.msra.gmra.mrb[0].mxu1 %v4818_v35 }
  0x5e   : > { %985 = vmatprep.mubr.f32.mxu0 %v6121_v10  ;;  %1597 = vmatprep.mubr.f32.mxu1 %v6121_v10 }
  0x5f   : > { %1020 = vmatpush1.msra.mxu0 %v714_v30  ;;  %1632 = vmatpush1.msra.mxu1 %v1326_v33 }
  0x60   : > { %1113 = vmatprep.subr.mxu0 %v4765_v7  ;;  %1725 = vmatprep.subr.mxu1 %v4767_v8 }
  0x61   : > { %989 = vmatmul.mubr.f32.gmra.mrb[2].mxu0 %v4821_v36  ;;  %1601 = vmatmul.mubr.f32.gmra.mrb[2].mxu1 %v4821_v36 }
  0x62   : > { %994 = vmatprep.mubr.f32.mxu0 %v6121_v10  ;;  %1606 = vmatprep.mubr.f32.mxu1 %v6121_v10 }
  0x65   : > { %998 = vmatmul.mubr.f32.gmra.mrb[4].mxu0 %v4846_v47  ;;  %1610 = vmatmul.mubr.f32.gmra.mrb[4].mxu1 %v4846_v47 }
  0x66   : > { %1003 = vmatprep.mubr.f32.mxu0 %v6121_v10  ;;  %1615 = vmatprep.mubr.f32.mxu1 %v6121_v10 }
  0x69   : > { %1007 = vmatmul.mubr.f32.gmra.mrb[6].mxu0 %v4851_v53  ;;  %1619 = vmatmul.mubr.f32.gmra.mrb[6].mxu1 %v4851_v53 }
  0x6a   : > { %1083 = vmatprep.mubr.f32.mxu0 %v6121_v10  ;;  %1695 = vmatprep.mubr.f32.mxu1 %v6121_v10 }
  0x6d   : > { %1085 = vmatmul.mubr.f32.vlgmr.msra.gmra.mrb[0].mxu0 %v4783_v19  ;;  %1697 = vmatmul.mubr.f32.vlgmr.msra.gmra.mrb[0].mxu1 %v4783_v19 }
  0x6e   : > { %1090 = vmatprep.mubr.f32.mxu0 %v6121_v10  ;;  %1702 = vmatprep.mubr.f32.mxu1 %v6121_v10 }
  0x6f   : > { %1115 = vmatpush1.msra.mxu0 %v4769_v9  ;;  %1727 = vmatpush1.msra.mxu1 %v4775_v14 }
  0x71   : > { %1092 = vmatmul.mubr.f32.gmra.mrb[2].mxu0 %v4785_v20  ;;  %1704 = vmatmul.mubr.f32.gmra.mrb[2].mxu1 %v4785_v20 }
  0x72   : > { %1097 = vmatprep.mubr.f32.mxu0 %v6121_v10  ;;  %1709 = vmatprep.mubr.f32.mxu1 %v6121_v10 }
  0x75   : > { %1099 = vmatmul.mubr.f32.gmra.mrb[4].mxu0 %v4812_v32  ;;  %1711 = vmatmul.mubr.f32.gmra.mrb[4].mxu1 %v4812_v32 }
  0x76   : > { %1104 = vmatprep.mubr.f32.mxu0 %v6121_v10  ;;  %1716 = vmatprep.mubr.f32.mxu1 %v6121_v10 }
  0x79   : > { %1106 = vmatmul.mubr.f32.gmra.mrb[6].mxu0 %v4815_v34  ;;  %1718 = vmatmul.mubr.f32.gmra.mrb[6].mxu1 %v4815_v34 }
  0x7a   : > { %1178 = vmatprep.mubr.f32.mxu0 %v6121_v10  ;;  %1790 = vmatprep.mubr.f32.mxu1 %v6121_v10 }
  0x7d   : > { %1180 = vmatmul.mubr.f32.vlgmr.msra.gmra.mrb[0].mxu0 %v4783_v19  ;;  %1792 = vmatmul.mubr.f32.vlgmr.msra.gmra.mrb[0].mxu1 %v4783_v19 }
  0x7e   : > { %1185 = vmatprep.mubr.f32.mxu0 %v6121_v10  ;;  %1797 = vmatprep.mubr.f32.mxu1 %v6121_v10 }
  0x81   : > { %1187 = vmatmul.mubr.f32.gmra.mrb[2].mxu0 %v4785_v20  ;;  %1799 = vmatmul.mubr.f32.gmra.mrb[2].mxu1 %v4785_v20 }
  0x82   : > { %1192 = vmatprep.mubr.f32.mxu0 %v6121_v10  ;;  %1804 = vmatprep.mubr.f32.mxu1 %v6121_v10 }
  0x85   : > { %1194 = vmatmul.mubr.f32.gmra.mrb[4].mxu0 %v4812_v32  ;;  %1806 = vmatmul.mubr.f32.gmra.mrb[4].mxu1 %v4812_v32 }
  0x86   : > { %1199 = vmatprep.mubr.f32.mxu0 %v6121_v10  ;;  %1811 = vmatprep.mubr.f32.mxu1 %v6121_v10 }
  0x89   : > { %1201 = vmatmul.mubr.f32.gmra.mrb[6].mxu0 %v4815_v34  ;;  %1813 = vmatmul.mubr.f32.gmra.mrb[6].mxu1 %v4815_v34 }
  0x8a   : > { %2906 = vmatprep.mubr.f32.mxu0 %v6121_v10  ;;  %3449 = vmatprep.mubr.f32.mxu1 %v6121_v10 }
 0x150   : > { %v4963_v57 = vpop.f32.mrb[0].mxu0  ;;  %v4965_v58 = vpop.f32.mrb[0].mxu1 }
 0x151   : > { %v1847_v59 = vmul.f32 %v4963_v57, %v4963_v57  ;;  %v4969_v60 = vpop.f32.mrb[1].mxu0  ;;  %v4971_v61 = vpop.f32.mrb[1].mxu1  ;;  %v1849_v0 = vmul.f32 %v4965_v58, %v4965_v58 }
 0x152   : > { %v1827_v62 = vadd.f32 %v4969_v60, %v4963_v57  ;;  %v1848_v63 = vmul.f32 %v4969_v60, %v4969_v60  ;;  %v1850_v8 = vmul.f32 %v4971_v61, %v4971_v61 }
 0x154   : > { %v4979_v1 = vpop.f32.mrb[2].mxu0  ;;  %v4981_v2 = vpop.f32.mrb[2].mxu1  ;;  %v1828_v3 = vadd.f32 %v1827_v62, %v4965_v58  ;;  %v1863_v4 = vadd.f32 %v1848_v63, %v1847_v59 }
 0x155   : > { %v1851_v5 = vmul.f32 %v4979_v1, %v4979_v1  ;;  %v4986_v6 = vpop.f32.mrb[3].mxu0  ;;  %v4988_v7 = vpop.f32.mrb[3].mxu1  ;;  %v1853_v14 = vmul.f32 %v4981_v2, %v4981_v2 }
 0x156   : > { %v1832_v9 = vadd.f32 %v4986_v6, %v4979_v1  ;;  %v1852_v11 = vmul.f32 %v4986_v6, %v4986_v6  ;;  %v1829_v12 = vadd.f32 %v1828_v3, %v4971_v61  ;;  %v1864_v13 = vadd.f32 %v1863_v4, %v1849_v0 }
 0x157   : > { %v1854_v23 = vmul.f32 %v4988_v7, %v4988_v7 }
 0x158   : > { %v4999_v15 = vpop.f32.mrb[4].mxu1  ;;  %1830 = vadd.xlane.f32.xlu0 %v1829_v12  ;;  %v5001_v16 = vpop.f32.mrb[4].mxu0  ;;  %v1865_v17 = vadd.f32 %v1864_v13, %v1850_v8  ;;  %v1833_v18 = vadd.f32 %v1832_v9, %v4981_v2  ;;  %v1868_v19 = vadd.f32 %v1852_v11, %v1851_v5 }
 0x159   : > { %v1855_v20 = vmul.f32 %v5001_v16, %v5001_v16  ;;  %v5006_v21 = vpop.f32.mrb[5].mxu0  ;;  %v5008_v22 = vpop.f32.mrb[5].mxu1  ;;  %v1857_v28 = vmul.f32 %v4999_v15, %v4999_v15 }
 0x15a   : > { %v1837_v24 = vadd.f32 %v5006_v21, %v5001_v16  ;;  %v1856_v25 = vmul.f32 %v5006_v21, %v5006_v21  ;;  %1866 = vadd.xlane.f32.xlu1 %v1865_v17  ;;  %v1834_v26 = vadd.f32 %v1833_v18, %v4988_v7  ;;  %v1869_v27 = vadd.f32 %v1868_v19, %v1853_v14 }
 0x15b   : > { %v1858_v37 = vmul.f32 %v5008_v22, %v5008_v22 }
 0x15c   : > { %v5019_v29 = vpop.f32.mrb[6].mxu1  ;;  %1835 = vadd.xlane.f32.xlu0 %v1834_v26  ;;  %v5021_v30 = vpop.f32.mrb[6].mxu0  ;;  %v1870_v31 = vadd.f32 %v1869_v27, %v1854_v23  ;;  %v1838_v32 = vadd.f32 %v1837_v24, %v4999_v15  ;;  %v1873_v33 = vadd.f32 %v1856_v25, %v1855_v20  ;;  %v1819_v25 = vld [vmem:[%s4727_s21] sm:$0xff] }
 0x15d   : > { %v1859_v34 = vmul.f32 %v5021_v30, %v5021_v30  ;;  %v5026_v35 = vpop.f32.mrb[7].mxu0  ;;  %v5028_v36 = vpop.f32.mrb[7].mxu1  ;;  %v1861_v42 = vmul.f32 %v5019_v29, %v5019_v29 }
 0x15e   : > { %v1842_v38 = vadd.f32 %v5026_v35, %v5021_v30  ;;  %v1860_v39 = vmul.f32 %v5026_v35, %v5026_v35  ;;  %1871 = vadd.xlane.f32.xlu1 %v1870_v31  ;;  %v1839_v40 = vadd.f32 %v1838_v32, %v5008_v22  ;;  %v1874_v41 = vadd.f32 %v1873_v33, %v1857_v28  ;;  %v1820_v32 = vld [vmem:[%s4727_s21 + $0x8] sm:$0xff] }
 0x15f   : > { %v1862_v47 = vmul.f32 %v5028_v36, %v5028_v36 }
 0x160   : > { %1840 = vadd.xlane.f32.xlu0 %v1839_v40  ;;  %v1875_v43 = vadd.f32 %v1874_v41, %v1858_v37  ;;  %v1843_v44 = vadd.f32 %v1842_v38, %v5019_v29  ;;  %v1878_v45 = vadd.f32 %v1860_v39, %v1859_v34  ;;  %v1823_v39 = vld [vmem:[%s4732_s24] sm:$0xff] }
 0x162   : > { %v1844_v46 = vadd.f32 %v1843_v44, %v5028_v36  ;;  %v1879_v48 = vadd.f32 %v1878_v45, %v1861_v42  ;;  %v1824_v42 = vld [vmem:[%s4732_s24 + $0x8] sm:$0xff]  ;;  %v1821_v45 = vld [vmem:[%s4727_s21 + $0x10] sm:$0xff] }
 0x164   : > { %1876 = vadd.xlane.f32.xlu0 %v1875_v43  ;;  %1845 = vadd.xlane.f32.xlu1 %v1844_v46  ;;  %v1880_v49 = vadd.f32 %v1879_v48, %v1862_v47  ;;  %v1822_v48 = vld [vmem:[%s4727_s21 + $0x18] sm:$0xff] }
 0x168   : > { %1881 = vadd.xlane.f32.xlu1 %v1880_v49 }
 0x1e5   : > { %v1831_v51 = vpop.xlane.xlu0 %1830 }
 0x1e6   : > { %v1883_v52 = vmul.f32 0.001953125, %v1831_v51  ;;  %v1825_v51 = vld [vmem:[%s4732_s24 + $0x10] sm:$0xff] }
 0x1e7   : > { %v1867_v53 = vpop.xlane.xlu1 %1866 }
 0x1e8   : > { %v1891_v54 = vmul.f32 %v1883_v52, %v1883_v52  ;;  %v1887_v55 = vmul.f32 0.001953125, %v1867_v53 }
 0x1e9   : > { %v1836_v56 = vpop.xlane.xlu0 %1835 }
 0x1ea   : > { %v1895_v59 = vsub.f32 %v1887_v55, %v1891_v54  ;;  %v1884_v62 = vmul.f32 0.001953125, %v1836_v56  ;;  %v1826_v54 = vld [vmem:[%s4732_s24 + $0x18] sm:$0xff] }
 0x1eb   : > { %v1872_v63 = vpop.xlane.xlu1 %1871 }
 0x1ec   : > { %v1899_v0 = vadd.f32 1e-05, %v1895_v59  ;;  %v1892_v3 = vmul.f32 %v1884_v62, %v1884_v62  ;;  %v1888_v4 = vmul.f32 0.001953125, %v1872_v63 }
 0x1ed   : > { %v1841_v5 = vpop.xlane.xlu0 %1840 }
 0x1ee   : > { %4420 = vrsqrt.f32 %v1899_v0  ;;  %v1896_v8 = vsub.f32 %v1888_v4, %v1892_v3  ;;  %v1885_v9 = vmul.f32 0.001953125, %v1841_v5 }
 0x1f0   : > { %v1900_v11 = vadd.f32 1e-05, %v1896_v8  ;;  %v1893_v14 = vmul.f32 %v1885_v9, %v1885_v9 }
 0x1f1   : > { %v1877_v12 = vpop.xlane.xlu0 %1876  ;;  %v1846_v13 = vpop.xlane.xlu1 %1845 }
 0x1f2   : > { %4422 = vrsqrt.f32 %v1900_v11  ;;  %v1889_v17 = vmul.f32 0.001953125, %v1877_v12  ;;  %v1886_v18 = vmul.f32 0.001953125, %v1846_v13 }
 0x1f4   : > { %v1897_v19 = vsub.f32 %v1889_v17, %v1893_v14  ;;  %v1894_v23 = vmul.f32 %v1886_v18, %v1886_v18 }
 0x1f5   : > { %v1882_v20 = vpop.xlane.xlu1 %1881 }
 0x1f6   : > { %v1890_v24 = vmul.f32 0.001953125, %v1882_v20  ;;  %v1901_v27 = vadd.f32 1e-05, %v1897_v19 }
 0x1f8   : > { %v4421_v26 = vpop.eup %4420  ;;  %v1898_v28 = vsub.f32 %v1890_v24, %v1894_v23  ;;  %4424 = vrsqrt.f32 %v1901_v27 }
 0x1f9   : > { %v1907_v31 = vmul.f32 %v4421_v26, %v1819_v25 }
 0x1fa   : > { %v1902_v34 = vadd.f32 1e-05, %v1898_v28 }
 0x1fb   : > { %1921 = vperm.xlu0 %4418, %v1907_v31   ;;  %v1911_v38 = vmul.f32 %v1907_v31, %v1883_v52 }
 0x1fc   : > { %v4423_v33 = vpop.eup %4422  ;;  %4426 = vrsqrt.f32 %v1902_v34 }
 0x1fd   : > { %v1908_v37 = vmul.f32 %v4423_v33, %v1820_v32  ;;  %v1915_v40 = vsub.f32 %v1823_v39, %v1911_v38 }
 0x1ff   : > { %1926 = vperm.xlu1 %4419, %v1908_v37   ;;  %v1912_v41 = vmul.f32 %v1908_v37, %v1884_v62 }
 0x201   : > { %v1916_v43 = vsub.f32 %v1824_v42, %v1912_v41 }
 0x202   : > { %v4425_v44 = vpop.eup %4424 }
 0x203   : > { %1957 = vperm.xlu1 %4419, %v1915_v40   ;;  %v1909_v46 = vmul.f32 %v4425_v44, %v1821_v45 }
 0x205   : > { %v1913_v50 = vmul.f32 %v1909_v46, %v1885_v9 }
 0x206   : > { %v4427_v47 = vpop.eup %4426 }
 0x207   : > { %1962 = vperm.xlu1 %4419, %v1916_v43   ;;  %v1910_v49 = vmul.f32 %v4427_v47, %v1822_v48  ;;  %v1917_v52 = vsub.f32 %v1825_v51, %v1913_v50 }
 0x209   : > { %v1914_v53 = vmul.f32 %v1910_v49, %v1886_v18 }
 0x20b   : > { %1931 = vperm.xlu1 %4419, %v1909_v46   ;;  %v1918_v55 = vsub.f32 %v1826_v54, %v1914_v53 }
 0x20f   : > { %1936 = vperm.xlu1 %4419, %v1910_v49  }
 0x213   : > { %1967 = vperm.xlu1 %4419, %v1917_v52  }
 0x217   : > { %1972 = vperm.xlu1 %4419, %v1918_v55  }
 0x27a   : > { %v1922_v56 = vpop.permute.xlu0 %1921 }
 0x27b   : > { %v1939_v62 = vmul.f32 %v1922_v56, %v4963_v57  ;;  %v1940_v63 = vmul.f32 %v1922_v56, %v4969_v60  ;;  %v1941_v0 = vmul.f32 %v1922_v56, %v4965_v58  ;;  %v1942_v3 = vmul.f32 %v1922_v56, %v4971_v61 }
 0x27e   : > { %v1927_v59 = vpop.permute.xlu1 %1926 }
 0x27f   : > { %v1943_v12 = vmul.f32 %v1927_v59, %v4979_v1  ;;  %v1944_v13 = vmul.f32 %v1927_v59, %v4986_v6  ;;  %v1945_v57 = vmul.f32 %v1927_v59, %v4981_v2  ;;  %v1946_v14 = vmul.f32 %v1927_v59, %v4988_v7 }
 0x282   : > { %v1958_v4 = vpop.permute.xlu1 %1957 }
 0x283   : > { %v5055_v5 = vadd.f32 %v1958_v4, %v1939_v62  ;;  %v5057_v8 = vadd.f32 %v1958_v4, %v1940_v63  ;;  %v5059_v9 = vadd.f32 %v1958_v4, %v1941_v0  ;;  %v5061_v11 = vadd.f32 %v1958_v4, %v1942_v3 }
 0x285   : > { %v4155_v60 = vmul.f32 -1.442695, %v5055_v5  ;;  %v4156_v58 = vmul.f32 -1.442695, %v5057_v8  ;;  %v4157_v61 = vmul.f32 -1.442695, %v5059_v9 }
 0x286   : > { %v4158_v17 = vmul.f32 -1.442695, %v5061_v11  ;;  %v1963_v18 = vpop.permute.xlu1 %1962 }
 0x287   : > { %4428 = vpow2.f32 %v4155_v60  ;;  %v5071_v19 = vadd.f32 %v1963_v18, %v1943_v12  ;;  %v5073_v20 = vadd.f32 %v1963_v18, %v1944_v13  ;;  %v5075_v1 = vadd.f32 %v1963_v18, %v1945_v57 }
 0x288   : > { %4430 = vpow2.f32 %v4156_v58  ;;  %v5077_v2 = vadd.f32 %v1963_v18, %v1946_v14 }
 0x289   : > { %4432 = vpow2.f32 %v4157_v61  ;;  %v4159_v6 = vmul.f32 -1.442695, %v5071_v19  ;;  %v4160_v23 = vmul.f32 -1.442695, %v5073_v20  ;;  %v4161_v7 = vmul.f32 -1.442695, %v5075_v1 }
 0x28a   : > { %4434 = vpow2.f32 %v4158_v17  ;;  %v1932_v24 = vpop.permute.xlu1 %1931  ;;  %v4162_v25 = vmul.f32 -1.442695, %v5077_v2 }
 0x28b   : > { %4436 = vpow2.f32 %v4159_v6  ;;  %v1947_v44 = vmul.f32 %v1932_v24, %v5001_v16  ;;  %v1948_v48 = vmul.f32 %v1932_v24, %v5006_v21  ;;  %v1949_v56 = vmul.f32 %v1932_v24, %v4999_v15 }
 0x28c   : > { %4438 = vpow2.f32 %v4160_v23 }
 0x28d   : > { %4440 = vpow2.f32 %v4161_v7 }
 0x28e   : > { %v5083_v26 = vpop.permute.xlu1 %1936  ;;  %4442 = vpow2.f32 %v4162_v25 }
 0x28f   : > { %v1951_v51 = vmul.f32 %v5083_v26, %v5021_v30  ;;  %v1952_v21 = vmul.f32 %v5083_v26, %v5026_v35  ;;  %v1950_v35 = vmul.f32 %v1932_v24, %v5008_v22 }
 0x291   : > { %v4429_v27 = vpop.eup %4428 }
 0x292   : > { %v4431_v28 = vpop.eup %4430  ;;  %v2039_v31 = vadd.f32 1.0, %v4429_v27  ;;  %v1968_v37 = vpop.permute.xlu1 %1967 }
 0x293   : > { %v4433_v32 = vpop.eup %4432  ;;  %v2040_v33 = vadd.f32 1.0, %v4431_v28  ;;  %v5086_v46 = vadd.f32 %v1968_v37, %v1947_v44  ;;  %v5091_v52 = vadd.f32 %v1968_v37, %v1948_v48  ;;  %v5102_v30 = vadd.f32 %v1968_v37, %v1949_v56 }
 0x294   : > { %v4435_v34 = vpop.eup %4434  ;;  %4444 = vrcp.f32 %v2039_v31  ;;  %v2041_v39 = vadd.f32 1.0, %v4433_v32  ;;  %v5119_v60 = vadd.f32 %v1968_v37, %v1950_v35 }
 0x295   : > { %v4437_v38 = vpop.eup %4436  ;;  %4446 = vrcp.f32 %v2040_v33  ;;  %v2042_v45 = vadd.f32 1.0, %v4435_v34  ;;  %v4163_v53 = vmul.f32 -1.442695, %v5086_v46  ;;  %v4164_v63 = vmul.f32 -1.442695, %v5091_v52 }
 0x296   : > { %v4439_v40 = vpop.eup %4438  ;;  %v2043_v41 = vadd.f32 1.0, %v4437_v38  ;;  %v1973_v49 = vpop.permute.xlu1 %1972  ;;  %v4165_v58 = vmul.f32 -1.442695, %v5102_v30 }
 0x297   : > { %v4441_v42 = vpop.eup %4440  ;;  %v2044_v43 = vadd.f32 1.0, %v4439_v40  ;;  %v5094_v16 = vadd.f32 %v1973_v49, %v1951_v51  ;;  %v5105_v0 = vadd.f32 %v1973_v49, %v1952_v21 }
 0x298   : > { %4448 = vrcp.f32 %v2043_v41  ;;  %v2045_v47 = vadd.f32 1.0, %v4441_v42  ;;  %v4443_v50 = vpop.eup %4442 }
 0x299   : > { %4450 = vrcp.f32 %v2041_v39  ;;  %v2046_v55 = vadd.f32 1.0, %v4443_v50  ;;  %v4167_v3 = vmul.f32 -1.442695, %v5094_v16  ;;  %v4168_v22 = vmul.f32 -1.442695, %v5105_v0 }
 0x29a   : > { %4452 = vrcp.f32 %v2044_v43 }
 0x29b   : > { %4454 = vrcp.f32 %v2042_v45 }
 0x29c   : > { %4456 = vrcp.f32 %v2045_v47 }
 0x29d   : > { %4458 = vpow2.f32 %v4163_v53 }
 0x29e   : > { %v4445_v54 = vpop.eup %4444  ;;  %4460 = vrcp.f32 %v2046_v55 }
 0x29f   : > { %v5100_v59 = vmul.f32 %v4445_v54, %v5055_v5  ;;  %v4447_v62 = vpop.eup %4446  ;;  %v1953_v5 = vmul.f32 %v5083_v26, %v5019_v29  ;;  %4462 = vpow2.f32 %v4164_v63 }
 0x2a0   : > { %v5114_v12 = vmul.f32 %v4447_v62, %v5057_v8  ;;  %4464 = vpow2.f32 %v4167_v3  ;;  %v1954_v8 = vmul.f32 %v5083_v26, %v5028_v36 }
 0x2a1   : > { %2103 = vrot.lane.b32.xlu1 %v5100_v59, %s4626_s8  ;;  %v5122_v61 = vadd.f32 %v1973_v49, %v1953_v5  ;;  %4466 = vpow2.f32 %v4165_v58 }
 0x2a2   : > { %v4449_v15 = vpop.eup %4448  ;;  %v5138_v6 = vadd.f32 %v1973_v49, %v1954_v8  ;;  %4468 = vpow2.f32 %v4168_v22 }
 0x2a3   : > { %v4451_v4 = vpop.eup %4450  ;;  %v5117_v13 = vmul.f32 %v4449_v15, %v5071_v19  ;;  %v4166_v19 = vmul.f32 -1.442695, %v5119_v60  ;;  %v4169_v23 = vmul.f32 -1.442695, %v5122_v61 }
 0x2a4   : > { %v4453_v57 = vpop.eup %4452  ;;  %v5132_v14 = vmul.f32 %v4451_v4, %v5059_v9  ;;  %v4170_v24 = vmul.f32 -1.442695, %v5138_v6 }
 0x2a5   : > { %2111 = vrot.lane.b32.xlu1 %v5114_v12, %s4626_s8  ;;  %2105 = vrot.lane.b32.xlu0 %v5117_v13, %s4626_s8  ;;  %v4455_v29 = vpop.eup %4454  ;;  %v5135_v17 = vmul.f32 %v4453_v57, %v5073_v20  ;;  %4470 = vpow2.f32 %v4166_v19 }
 0x2a6   : > { %v4457_v18 = vpop.eup %4456  ;;  %v5146_v9 = vmul.f32 %v4455_v29, %v5061_v11  ;;  %4472 = vpow2.f32 %v4169_v23  ;;  %v575_v29 = vld [vmem:[%s6108_s2] sm:$0xf] }
 0x2a7   : > { %v4459_v36 = vpop.eup %4458  ;;  %v5149_v20 = vmul.f32 %v4457_v18, %v5075_v1  ;;  %4474 = vpow2.f32 %v4170_v24 }
 0x2a8   : > { %v4461_v7 = vpop.eup %4460  ;;  %v2047_v26 = vadd.f32 1.0, %v4459_v36 }
 0x2a9   : > { %2119 = vrot.lane.b32.xlu1 %v5132_v14, %s4626_s8  ;;  %2113 = vrot.lane.b32.xlu0 %v5135_v17, %s4626_s8  ;;  %v4463_v25 = vpop.eup %4462  ;;  %v5157_v11 = vmul.f32 %v4461_v7, %v5077_v2 }
 0x2aa   : > { %v4465_v27 = vpop.eup %4464  ;;  %v2048_v28 = vadd.f32 1.0, %v4463_v25  ;;  %4476 = vrcp.f32 %v2047_v26 }
 0x2ab   : > { %v4467_v1 = vpop.eup %4466  ;;  %v2051_v31 = vadd.f32 1.0, %v4465_v27 }
 0x2ac   : > { %v4469_v32 = vpop.eup %4468  ;;  %v2049_v33 = vadd.f32 1.0, %v4467_v1  ;;  %4478 = vrcp.f32 %v2048_v28 }
 0x2ad   : > { %2127 = vrot.lane.b32.xlu1 %v5146_v9, %s4626_s8  ;;  %2121 = vrot.lane.b32.xlu0 %v5149_v20, %s4626_s8  ;;  %v2052_v34 = vadd.f32 1.0, %v4469_v32  ;;  %4480 = vrcp.f32 %v2051_v31 }
 0x2ae   : > { %4482 = vrcp.f32 %v2049_v33 }
 0x2af   : > { %v4471_v2 = vpop.eup %4470  ;;  %4484 = vrcp.f32 %v2052_v34 }
 0x2b0   : > { %v4473_v37 = vpop.eup %4472  ;;  %v2050_v38 = vadd.f32 1.0, %v4471_v2 }
 0x2b1   : > { %2207 = vrot.lane.b32.xlu1 %v5100_v59, %s4627_s15  ;;  %2129 = vrot.lane.b32.xlu0 %v5157_v11, %s4626_s8  ;;  %v2053_v39 = vadd.f32 1.0, %v4473_v37  ;;  %v4475_v40 = vpop.eup %4474 }
 0x2b2   : > { %4486 = vrcp.f32 %v2050_v38  ;;  %v2054_v42 = vadd.f32 1.0, %v4475_v40 }
 0x2b3   : > { %4488 = vrcp.f32 %v2053_v39 }
 0x2b4   : > { %v4477_v41 = vpop.eup %4476  ;;  %4490 = vrcp.f32 %v2054_v42 }
 0x2b5   : > { %2215 = vrot.lane.b32.xlu1 %v5114_v12, %s4627_s15  ;;  %2209 = vrot.lane.b32.xlu0 %v5117_v13, %s4627_s15  ;;  %v5176_v44 = vmul.f32 %v4477_v41, %v5086_v46 }
 0x2b6   : > { %v4479_v43 = vpop.eup %4478 }
 0x2b7   : > { %v4481_v45 = vpop.eup %4480  ;;  %v5183_v48 = vmul.f32 %v4479_v43, %v5091_v52 }
 0x2b8   : > { %v4483_v47 = vpop.eup %4482  ;;  %v5186_v49 = vmul.f32 %v4481_v45, %v5094_v16 }
 0x2b9   : > { %2223 = vrot.lane.b32.xlu1 %v5132_v14, %s4627_s15  ;;  %2217 = vrot.lane.b32.xlu0 %v5135_v17, %s4627_s15  ;;  %v4485_v50 = vpop.eup %4484  ;;  %v5193_v51 = vmul.f32 %v4483_v47, %v5102_v30  ;;  %v2135_v30 = vlaneseq }
 0x2ba   : > { %v5196_v53 = vmul.f32 %v4485_v50, %v5105_v0 }
 0x2bb   : > { %v2156_v0 = vshrl.u32 %v2135_v30, 7  ;;  %v5235_v35 = vand.u32 127, %v2135_v30 }
 0x2bc   : > { %v4487_v46 = vpop.eup %4486  ;;  %6135 = vst [vmem:[#allocation7_spill] sm:$0xff] %v5196_v53 }
 0x2bd   : > { %2231 = vrot.lane.b32.xlu1 %v5146_v9, %s4627_s15  ;;  %2225 = vrot.lane.b32.xlu0 %v5149_v20, %s4627_s15  ;;  %v4489_v54 = vpop.eup %4488  ;;  %v5203_v52 = vmul.f32 %v4487_v46, %v5119_v60  ;;  %v5237_v4 = vsub.s32 0, %v2156_v0  ;;  %v574_v60 = vld [vmem:[%s6107_s1] sm:$0xf]  ;;  %v5244_v58 = vsub.s32 1, %v2156_v0  ;;  %vm2137_vm1 = vcmp.lt.s32.totalorder %v5235_v35, 1 }
 0x2be   : > { %v5206_v16 = vmul.f32 %v4489_v54, %v5122_v61  ;;  %v4491_v55 = vpop.eup %4490  ;;  %v5255_v8 = vsub.s32 3, %v2156_v0  ;;  %vm2239_vm2 = vcmp.lt.s32.totalorder %v5235_v35, 127  ;;  %v5269_v25 = vsub.s32 2, %v2156_v0 }
 0x2bf   : > { %v5213_v56 = vmul.f32 %v4491_v55, %v5138_v6  ;;  %v5248_v61 = vrot.slane %v574_v60, %v5237_v4  ;;  %v5258_v6 = vrot.slane %v574_v60, %v5244_v58  ;;  %v5265_v7 = vrot.slane %v575_v29, %v5237_v4 }
 0x2c0   : > { %6136 = vst [vmem:[#allocation8_spill] sm:$0xff] %v5206_v16  ;;  %v5272_v26 = vrot.slane %v574_v60, %v5255_v8  ;;  %v5281_v33 = vrot.slane %v575_v29, %v5244_v58  ;;  %v5290_v40 = vrot.slane %v574_v60, %v5269_v25  ;;  %v5295_v45 = vrot.slane %v575_v29, %v5255_v8 }
 0x2c1   : > { %2233 = vrot.lane.b32.xlu0 %v5157_v11, %s4627_s15  ;;  %2107 = vrot.lane.b32.xlu1 %v5176_v44, %s4626_s8  ;;  %6137 = vst [vmem:[#allocation9_spill] sm:$0xff] %v5213_v56  ;;  %v5314_v0 = vrot.slane %v575_v29, %v5269_v25  ;;  %vm2341_vm3 = vcmp.lt.s32.totalorder %v5235_v35, 16  ;;  %vm2443_vm4 = vcmp.lt.s32.totalorder %v5235_v35, 112 }
 0x2c5   : > { %2115 = vrot.lane.b32.xlu1 %v5183_v48, %s4626_s8  ;;  %2109 = vrot.lane.b32.xlu0 %v5186_v49, %s4626_s8 }
 0x2c9   : > { %2123 = vrot.lane.b32.xlu1 %v5193_v51, %s4626_s8  ;;  %2117 = vrot.lane.b32.xlu0 %v5196_v53, %s4626_s8 }
 0x2cd   : > { %2131 = vrot.lane.b32.xlu1 %v5203_v52, %s4626_s8  ;;  %2125 = vrot.lane.b32.xlu0 %v5206_v16, %s4626_s8 }
 0x2d1   : > { %2211 = vrot.lane.b32.xlu1 %v5176_v44, %s4627_s15  ;;  %2133 = vrot.lane.b32.xlu0 %v5213_v56, %s4626_s8 }
 0x2d5   : > { %2219 = vrot.lane.b32.xlu1 %v5183_v48, %s4627_s15  ;;  %2213 = vrot.lane.b32.xlu0 %v5186_v49, %s4627_s15 }
 0x2d9   : > { %2227 = vrot.lane.b32.xlu1 %v5193_v51, %s4627_s15  ;;  %2221 = vrot.lane.b32.xlu0 %v5196_v53, %s4627_s15 }
 0x2dd   : > { %2235 = vrot.lane.b32.xlu1 %v5203_v52, %s4627_s15  ;;  %2229 = vrot.lane.b32.xlu0 %v5206_v16, %s4627_s15 }
 0x2e1   : > { %2237 = vrot.lane.b32.xlu0 %v5213_v56, %s4627_s15 }
 0x313   : > { %v2104_v21 = vpop.permute.xlu1 %2103 }
 0x317   : > { %v2106_v62 = vpop.permute.xlu0 %2105  ;;  %v2112_v63 = vpop.permute.xlu1 %2111 }
 0x318   : > { %v2146_v23 = vsel %vm2137_vm1, %v2104_v21, %v2112_v63 }
 0x319   : > { %v2176_v1 = vmul.f32 %v5258_v6, %v2146_v23 }
 0x31b   : > { %v5233_v3 = vpop.permute.xlu0 %2113  ;;  %v2120_v15 = vpop.permute.xlu1 %2119  ;;  %v2192_v55 = vadd.f32 %v2176_v1, %v5114_v12 }
 0x31c   : > { %v2147_v31 = vsel %vm2137_vm1, %v2106_v62, %v5233_v3  ;;  %v2142_v47 = vsel %vm2137_vm1, %v2112_v63, %v2120_v15 }
 0x31d   : > { %v2180_v39 = vmul.f32 %v5258_v6, %v2147_v31 }
 0x31f   : > { %v5239_v5 = vpop.permute.xlu0 %2121  ;;  %v2128_v57 = vpop.permute.xlu1 %2127 }
 0x320   : > { %v2150_v22 = vsel %vm2137_vm1, %v2128_v57, %v2104_v21  ;;  %v2138_v2 = vsel %vm2137_vm1, %v2120_v15, %v2128_v57  ;;  %v2196_v15 = vadd.f32 %v2180_v39, %v5135_v17  ;;  %v2177_v57 = vmul.f32 %v5290_v40, %v2142_v47 }
 0x321   : > { %v2175_v36 = vmul.f32 %v5248_v61, %v2150_v22  ;;  %v2178_v50 = vmul.f32 %v5272_v26, %v2138_v2  ;;  %v2143_v2 = vsel %vm2137_vm1, %v5233_v3, %v5239_v5 }
 0x323   : > { %v2130_v18 = vpop.permute.xlu0 %2129  ;;  %v2208_v19 = vpop.permute.xlu1 %2207  ;;  %v2191_v34 = vadd.f32 %v2175_v36, %v5100_v59 }
 0x324   : > { %v2151_v24 = vsel %vm2137_vm1, %v2130_v18, %v2106_v62  ;;  %v2139_v63 = vsel %vm2137_vm1, %v5239_v5, %v2130_v18 }
 0x325   : > { %v2179_v37 = vmul.f32 %v5248_v61, %v2151_v24  ;;  %v2194_v24 = vadd.f32 %v2178_v50, %v5146_v9  ;;  %v2182_v1 = vmul.f32 %v5272_v26, %v2139_v63  ;;  %v2181_v50 = vmul.f32 %v5290_v40, %v2143_v2 }
 0x327   : > { %v2210_v27 = vpop.permute.xlu0 %2209  ;;  %v2216_v28 = vpop.permute.xlu1 %2215  ;;  %v2195_v21 = vadd.f32 %v2179_v37, %v5117_v13  ;;  %v2198_v3 = vadd.f32 %v2182_v1, %v5157_v11 }
 0x328   : > { %v2248_v32 = vsel %vm2239_vm2, %v2208_v19, %v2216_v28 }
 0x329   : > { %v2277_v38 = vmul.f32 %v5265_v7, %v2248_v32 }
 0x32b   : > { %v2218_v41 = vpop.permute.xlu0 %2217  ;;  %v2224_v42 = vpop.permute.xlu1 %2223  ;;  %v5292_v43 = vadd.f32 %v2277_v38, %v2191_v34 }
 0x32c   : > { %v2249_v46 = vsel %vm2239_vm2, %v2210_v27, %v2218_v41  ;;  %v2244_v54 = vsel %vm2239_vm2, %v2216_v28, %v2224_v42 }
 0x32d   : > { %v2281_v62 = vmul.f32 %v5265_v7, %v2249_v46  ;;  %v2278_v30 = vmul.f32 %v5281_v33, %v2244_v54  ;;  %2309 = vrot.lane.b32.xlu1 %v5292_v43, %s4628_s20 }
 0x32f   : > { %v2226_v60 = vpop.permute.xlu0 %2225  ;;  %v2232_v22 = vpop.permute.xlu1 %2231  ;;  %v5318_v23 = vadd.f32 %v2281_v62, %v2195_v21  ;;  %v5320_v36 = vadd.f32 %v2278_v30, %v2192_v55 }
 0x330   : > { %v2245_v28 = vsel %vm2239_vm2, %v2218_v41, %v2226_v60  ;;  %v2240_v18 = vsel %vm2239_vm2, %v2224_v42, %v2232_v22  ;;  %v2252_v29 = vsel %vm2239_vm2, %v2232_v22, %v2208_v19  ;;  %v2193_v41 = vadd.f32 %v2177_v57, %v5132_v14 }
 0x331   : > { %v2282_v31 = vmul.f32 %v5281_v33, %v2245_v28  ;;  %v2280_v32 = vmul.f32 %v5295_v45, %v2252_v29  ;;  %2311 = vrot.lane.b32.xlu0 %v5318_v23, %s4628_s20  ;;  %2317 = vrot.lane.b32.xlu1 %v5320_v36, %s4628_s20  ;;  %v2279_v34 = vmul.f32 %v5314_v0, %v2240_v18 }
 0x333   : > { %v2234_v19 = vpop.permute.xlu0 %2233  ;;  %v2108_v37 = vpop.permute.xlu1 %2107  ;;  %v5341_v38 = vadd.f32 %v2282_v31, %v2196_v15  ;;  %v5343_v39 = vadd.f32 %v2280_v32, %v2194_v24  ;;  %v5360_v62 = vadd.f32 %v2279_v34, %v2193_v41 }
 0x334   : > { %v2241_v42 = vsel %vm2239_vm2, %v2226_v60, %v2234_v19  ;;  %v2253_v47 = vsel %vm2239_vm2, %v2234_v19, %v2210_v27  ;;  %v2197_v27 = vadd.f32 %v2181_v50, %v5149_v20 }
 0x335   : > { %v2284_v5 = vmul.f32 %v5295_v45, %v2253_v47  ;;  %2319 = vrot.lane.b32.xlu0 %v5341_v38, %s4628_s20  ;;  %2333 = vrot.lane.b32.xlu1 %v5343_v39, %s4628_s20  ;;  %v2283_v46 = vmul.f32 %v5314_v0, %v2241_v42 }
 0x337   : > { %v2110_v54 = vpop.permute.xlu0 %2109  ;;  %v2116_v55 = vpop.permute.xlu1 %2115  ;;  %v5358_v21 = vadd.f32 %v2284_v5, %v2198_v3  ;;  %v5367_v15 = vadd.f32 %v2283_v46, %v2197_v27 }
 0x338   : > { %v2148_v18 = vsel %vm2137_vm1, %v2108_v37, %v2116_v55 }
 0x339   : > { %2335 = vrot.lane.b32.xlu0 %v5358_v21, %s4628_s20  ;;  %2325 = vrot.lane.b32.xlu1 %v5360_v62, %s4628_s20  ;;  %v2184_v31 = vmul.f32 %v5258_v6, %v2148_v18 }
 0x33b   : > { %v2118_v30 = vpop.permute.xlu0 %2117  ;;  %v2124_v63 = vpop.permute.xlu1 %2123  ;;  %v2200_v50 = vadd.f32 %v2184_v31, %v5183_v48 }
 0x33c   : > { %v2149_v34 = vsel %vm2137_vm1, %v2110_v54, %v2118_v30  ;;  %v2144_v27 = vsel %vm2137_vm1, %v2116_v55, %v2124_v63 }
 0x33d   : > { %2327 = vrot.lane.b32.xlu0 %v5367_v15, %s4628_s20  ;;  %2411 = vrot.lane.b32.xlu1 %v5292_v43, %s4629_s23  ;;  %v2188_v3 = vmul.f32 %v5258_v6, %v2149_v34 }
 0x33f   : > { %v2126_v57 = vpop.permute.xlu0 %2125  ;;  %v2132_v60 = vpop.permute.xlu1 %2131 }
 0x340   : > { %v2152_v22 = vsel %vm2137_vm1, %v2132_v60, %v2108_v37  ;;  %v2140_v19 = vsel %vm2137_vm1, %v2124_v63, %v2132_v60  ;;  %v2204_v63 = vadd.f32 %v2188_v3, %v5196_v53 }
 0x341   : > { %2413 = vrot.lane.b32.xlu0 %v5318_v23, %s4629_s23  ;;  %2419 = vrot.lane.b32.xlu1 %v5320_v36, %s4629_s23  ;;  %v2183_v29 = vmul.f32 %v5248_v61, %v2152_v22 }
 0x343   : > { %v2134_v24 = vpop.permute.xlu0 %2133  ;;  %v2212_v28 = vpop.permute.xlu1 %2211  ;;  %v2199_v41 = vadd.f32 %v2183_v29, %v5176_v44 }
 0x344   : > { %v2153_v1 = vsel %vm2137_vm1, %v2134_v24, %v2110_v54  ;;  %v2141_v55 = vsel %vm2137_vm1, %v2126_v57, %v2134_v24 }
 0x345   : > { %2421 = vrot.lane.b32.xlu0 %v5341_v38, %s4629_s23  ;;  %2427 = vrot.lane.b32.xlu1 %v5360_v62, %s4629_s23  ;;  %v2187_v42 = vmul.f32 %v5248_v61, %v2153_v1  ;;  %v2186_v61 = vmul.f32 %v5272_v26, %v2140_v19  ;;  %v2185_v1 = vmul.f32 %v5290_v40, %v2144_v27 }
 0x347   : > { %v2214_v32 = vpop.permute.xlu0 %2213  ;;  %v2220_v2 = vpop.permute.xlu1 %2219  ;;  %v2203_v18 = vadd.f32 %v2187_v42, %v5186_v49  ;;  %v2202_v19 = vadd.f32 %v2186_v61, %v5203_v52  ;;  %v2190_v42 = vmul.f32 %v5272_v26, %v2141_v55  ;;  %v2201_v26 = vadd.f32 %v2185_v1, %v5193_v51 }
 0x348   : > { %v2250_v37 = vsel %vm2239_vm2, %v2212_v28, %v2220_v2 }
 0x349   : > { %v2285_v47 = vmul.f32 %v5265_v7, %v2250_v37  ;;  %2429 = vrot.lane.b32.xlu0 %v5367_v15, %s4629_s23  ;;  %2435 = vrot.lane.b32.xlu1 %v5343_v39, %s4629_s23 }
 0x34b   : > { %v2222_v5 = vpop.permute.xlu0 %2221  ;;  %v2228_v46 = vpop.permute.xlu1 %2227  ;;  %v5404_v54 = vadd.f32 %v2285_v47, %v2199_v41 }
 0x34c   : > { %v2251_v60 = vsel %vm2239_vm2, %v2214_v32, %v2222_v5  ;;  %v2246_v22 = vsel %vm2239_vm2, %v2220_v2, %v2228_v46 }
 0x34d   : > { %v2289_v29 = vmul.f32 %v5265_v7, %v2251_v60  ;;  %v2286_v6 = vmul.f32 %v5281_v33, %v2246_v22  ;;  %2437 = vrot.lane.b32.xlu0 %v5358_v21, %s4629_s23  ;;  %2313 = vrot.lane.b32.xlu1 %v5404_v54, %s4628_s20  ;;  %v2206_v22 = vadd.f32 %v2190_v42, %v5213_v56 }
 0x34f   : > { %v2230_v31 = vpop.permute.xlu0 %2229  ;;  %v2236_v2 = vpop.permute.xlu1 %2235  ;;  %v5424_v34 = vadd.f32 %v2289_v29, %v2203_v18  ;;  %v5426_v7 = vadd.f32 %v2286_v6, %v2200_v50  ;;  %v2145_v50 = vsel %vm2137_vm1, %v2118_v30, %v2126_v57 }
 0x350   : > { %v2247_v37 = vsel %vm2239_vm2, %v2222_v5, %v2230_v31  ;;  %v2242_v41 = vsel %vm2239_vm2, %v2228_v46, %v2236_v2  ;;  %v2254_v24 = vsel %vm2239_vm2, %v2236_v2, %v2212_v28  ;;  %v2189_v60 = vmul.f32 %v5290_v40, %v2145_v50  ;;  %v576_v2 = vld [vmem:[%s6109_s3] sm:$0xf] }
 0x351   : > { %v2290_v47 = vmul.f32 %v5281_v33, %v2247_v37  ;;  %v2288_v3 = vmul.f32 %v5295_v45, %v2254_v24  ;;  %2315 = vrot.lane.b32.xlu0 %v5424_v34, %s4628_s20  ;;  %2321 = vrot.lane.b32.xlu1 %v5426_v7, %s4628_s20  ;;  %v2287_v5 = vmul.f32 %v5314_v0, %v2242_v41 }
 0x352   : > { %v5499_v37 = vrot.slane %v576_v2, %v5237_v4  ;;  %v5502_v42 = vrot.slane %v576_v2, %v5244_v58 }
 0x353   : > { %v2238_v46 = vpop.permute.xlu0 %2237  ;;  %v5445_v27 = vadd.f32 %v2290_v47, %v2204_v63  ;;  %v5447_v28 = vadd.f32 %v2288_v3, %v2202_v19  ;;  %v5464_v29 = vadd.f32 %v2287_v5, %v2201_v26  ;;  %v577_v19 = vld [vmem:[%s6110_s4] sm:$0xf] }
 0x354   : > { %v2243_v33 = vsel %vm2239_vm2, %v2230_v31, %v2238_v46  ;;  %v2255_v61 = vsel %vm2239_vm2, %v2238_v46, %v2214_v32  ;;  %v2205_v32 = vadd.f32 %v2189_v60, %v5206_v16  ;;  %v5510_v50 = vrot.slane %v577_v19, %v5237_v4 }
 0x355   : > { %v2292_v30 = vmul.f32 %v5295_v45, %v2255_v61  ;;  %2323 = vrot.lane.b32.xlu0 %v5445_v27, %s4628_s20  ;;  %2337 = vrot.lane.b32.xlu1 %v5447_v28, %s4628_s20  ;;  %v2291_v57 = vmul.f32 %v5314_v0, %v2243_v33 }
 0x357   : > { %v5462_v18 = vadd.f32 %v2292_v30, %v2206_v22  ;;  %v5471_v40 = vadd.f32 %v2291_v57, %v2205_v32  ;;  %v5519_v22 = vrot.slane %v576_v2, %v5269_v25 }
 0x359   : > { %2339 = vrot.lane.b32.xlu0 %v5462_v18, %s4628_s20  ;;  %2329 = vrot.lane.b32.xlu1 %v5464_v29, %s4628_s20 }
 0x35d   : > { %2331 = vrot.lane.b32.xlu0 %v5471_v40, %s4628_s20  ;;  %2415 = vrot.lane.b32.xlu1 %v5404_v54, %s4629_s23 }
 0x361   : > { %2417 = vrot.lane.b32.xlu0 %v5424_v34, %s4629_s23  ;;  %2423 = vrot.lane.b32.xlu1 %v5426_v7, %s4629_s23 }
 0x365   : > { %2425 = vrot.lane.b32.xlu0 %v5445_v27, %s4629_s23  ;;  %2431 = vrot.lane.b32.xlu1 %v5464_v29, %s4629_s23 }
 0x369   : > { %2433 = vrot.lane.b32.xlu0 %v5471_v40, %s4629_s23  ;;  %2439 = vrot.lane.b32.xlu1 %v5447_v28, %s4629_s23 }
 0x36d   : > { %2441 = vrot.lane.b32.xlu0 %v5462_v18, %s4629_s23 }
 0x39f   : > { %v2310_v45 = vpop.permute.xlu1 %2309 }
 0x3a3   : > { %v2312_v0 = vpop.permute.xlu0 %2311  ;;  %v2318_v6 = vpop.permute.xlu1 %2317 }
 0x3a4   : > { %v2350_v3 = vsel %vm2341_vm3, %v2310_v45, %v2318_v6 }
 0x3a5   : > { %v2380_v60 = vmul.f32 %v5502_v42, %v2350_v3  ;;  %v5535_v3 = vrot.slane %v577_v19, %v5269_v25 }
 0x3a7   : > { %v2320_v55 = vpop.permute.xlu0 %2319  ;;  %v2334_v63 = vpop.permute.xlu1 %2333 }
 0x3a8   : > { %v2354_v47 = vsel %vm2341_vm3, %v2334_v63, %v2310_v45  ;;  %v2351_v46 = vsel %vm2341_vm3, %v2312_v0, %v2320_v55  ;;  %v5528_v45 = vrot.slane %v577_v19, %v5244_v58 }
 0x3a9   : > { %v2379_v26 = vmul.f32 %v5499_v37, %v2354_v47  ;;  %v5532_v47 = vrot.slane %v576_v2, %v5255_v8 }
 0x3ab   : > { %v2336_v1 = vpop.permute.xlu0 %2335  ;;  %v2326_v31 = vpop.permute.xlu1 %2325  ;;  %v2395_v10 = vadd.f32 %v2379_v26, %v5292_v43 }
 0x3ac   : > { %v2355_v5 = vsel %vm2341_vm3, %v2336_v1, %v2312_v0  ;;  %v2346_v57 = vsel %vm2341_vm3, %v2318_v6, %v2326_v31  ;;  %v2384_v0 = vmul.f32 %v5502_v42, %v2351_v46  ;;  %v2396_v46 = vadd.f32 %v2380_v60, %v5320_v36 }
 0x3ad   : > { %v2383_v4 = vmul.f32 %v5499_v37, %v2355_v5  ;;  %v2342_v5 = vsel %vm2341_vm3, %v2326_v31, %v2334_v63  ;;  %v2381_v2 = vmul.f32 %v5519_v22, %v2346_v57  ;;  %v5557_v60 = vrot.slane %v577_v19, %v5255_v8 }
 0x3ae   : > { %v2400_v57 = vadd.f32 %v2384_v0, %v5341_v38 }
 0x3af   : > { %v2328_v41 = vpop.permute.xlu0 %2327  ;;  %v2412_v24 = vpop.permute.xlu1 %2411  ;;  %v2399_v63 = vadd.f32 %v2383_v4, %v5318_v23 }
 0x3b0   : > { %v2343_v6 = vsel %vm2341_vm3, %v2328_v41, %v2336_v1  ;;  %v2347_v58 = vsel %vm2341_vm3, %v2320_v55, %v2328_v41  ;;  %v2382_v55 = vmul.f32 %v5532_v47, %v2342_v5 }
 0x3b1   : > { %v2385_v41 = vmul.f32 %v5519_v22, %v2347_v58  ;;  %v2386_v36 = vmul.f32 %v5532_v47, %v2343_v6 }
 0x3b2   : > { %v2398_v0 = vadd.f32 %v2382_v55, %v5343_v39 }
 0x3b3   : > { %v2414_v33 = vpop.permute.xlu0 %2413  ;;  %v2420_v61 = vpop.permute.xlu1 %2419  ;;  %v2402_v58 = vadd.f32 %v2386_v36, %v5358_v21 }
 0x3b4   : > { %v2452_v30 = vsel %vm2443_vm4, %v2412_v24, %v2420_v61 }
 0x3b5   : > { %v2481_v32 = vmul.f32 %v5510_v50, %v2452_v30 }
 0x3b7   : > { %v2422_v30 = vpop.permute.xlu0 %2421  ;;  %v2428_v56 = vpop.permute.xlu1 %2427  ;;  %v2497_v31 = vadd.f32 %v2481_v32, %v2395_v10  ;;  %v2397_v10 = vadd.f32 %v2381_v2, %v5360_v62  ;;  %v2401_v62 = vadd.f32 %v2385_v41, %v5367_v15 }
 0x3b8   : > { %v2453_v25 = vsel %vm2443_vm4, %v2414_v33, %v2422_v30  ;;  %v2448_v43 = vsel %vm2443_vm4, %v2420_v61, %v2428_v56 }
 0x3b9   : > { %v2485_v1 = vmul.f32 %v5510_v50, %v2453_v25  ;;  %v2482_v26 = vmul.f32 %v5528_v45, %v2448_v43  ;;  %v5567_v6 = vmul.f32 0.11111111, %v2497_v31 }
 0x3bb   : > { %v2501_v16 = vadd.f32 %v2485_v1, %v2399_v63  ;;  %v2498_v61 = vadd.f32 %v2482_v26, %v2396_v46  ;;  %v2430_v53 = vpop.permute.xlu0 %2429  ;;  %v2436_v23 = vpop.permute.xlu1 %2435  ;;  %v2557_v41 = vmul.f32 %v5567_v6, %v5567_v6 }
 0x3bc   : > { %v2449_v4 = vsel %vm2443_vm4, %v2422_v30, %v2430_v53  ;;  %v2444_v32 = vsel %vm2443_vm4, %v2428_v56, %v2436_v23  ;;  %v2456_v5 = vsel %vm2443_vm4, %v2436_v23, %v2412_v24 }
 0x3bd   : > { %v5569_v8 = vmul.f32 0.11111111, %v2498_v61  ;;  %v2486_v38 = vmul.f32 %v5528_v45, %v2449_v4  ;;  %v2483_v19 = vmul.f32 %v5535_v3, %v2444_v32  ;;  %v2484_v30 = vmul.f32 %v5557_v60, %v2456_v5 }
 0x3be   : > { %v5577_v56 = vmul.f32 0.11111111, %v2501_v16 }
 0x3bf   : > { %v2502_v46 = vadd.f32 %v2486_v38, %v2400_v57  ;;  %v2499_v24 = vadd.f32 %v2483_v19, %v2397_v10  ;;  %v2438_v2 = vpop.permute.xlu0 %2437  ;;  %v2314_v25 = vpop.permute.xlu1 %2313  ;;  %v2537_v43 = vadd.f32 %v5569_v8, %v5567_v6  ;;  %v2500_v63 = vadd.f32 %v2484_v30, %v2398_v0 }
 0x3c0   : > { %v2445_v31 = vsel %vm2443_vm4, %v2430_v53, %v2438_v2  ;;  %v2457_v39 = vsel %vm2443_vm4, %v2438_v2, %v2414_v33  ;;  %v2558_v21 = vmul.f32 %v5569_v8, %v5569_v8  ;;  %v2561_v19 = vmul.f32 %v5577_v56, %v5577_v56 }
 0x3c1   : > { %v5587_v15 = vmul.f32 0.11111111, %v2502_v46  ;;  %v5589_v16 = vmul.f32 0.11111111, %v2499_v24  ;;  %v2487_v1 = vmul.f32 %v5535_v3, %v2445_v31  ;;  %v2488_v26 = vmul.f32 %v5557_v60, %v2457_v39 }
 0x3c2   : > { %v5593_v55 = vmul.f32 0.11111111, %v2500_v63  ;;  %v2573_v10 = vadd.f32 %v2558_v21, %v2557_v41 }
 0x3c3   : > { %v2503_v53 = vadd.f32 %v2487_v1, %v2401_v62  ;;  %v2504_v36 = vadd.f32 %v2488_v26, %v2402_v58  ;;  %v2316_v57 = vpop.permute.xlu0 %2315  ;;  %v2322_v33 = vpop.permute.xlu1 %2321  ;;  %v2538_v61 = vadd.f32 %v2537_v43, %v5589_v16  ;;  %v2559_v23 = vmul.f32 %v5589_v16, %v5589_v16 }
 0x3c4   : > { %v2562_v4 = vmul.f32 %v5587_v15, %v5587_v15  ;;  %v2560_v0 = vmul.f32 %v5593_v55, %v5593_v55  ;;  %v2542_v58 = vadd.f32 %v5587_v15, %v5577_v56 }
 0x3c5   : > { %v5602_v32 = vmul.f32 0.11111111, %v2503_v53  ;;  %v5604_v5 = vmul.f32 0.11111111, %v2504_v36  ;;  %v2539_v38 = vadd.f32 %v2538_v61, %v5593_v55  ;;  %v2574_v62 = vadd.f32 %v2573_v10, %v2559_v23 }
 0x3c6   : > { %v2578_v2 = vadd.f32 %v2562_v4, %v2561_v19  ;;  %v2352_v23 = vsel %vm2341_vm3, %v2314_v25, %v2322_v33 }
 0x3c7   : > { %v2324_v30 = vpop.permute.xlu0 %2323  ;;  %2540 = vadd.xlane.f32.xlu1 %v2539_v38  ;;  %v2338_v46 = vpop.permute.xlu1 %2337  ;;  %v2563_v24 = vmul.f32 %v5602_v32, %v5602_v32  ;;  %v2575_v43 = vadd.f32 %v2574_v62, %v2560_v0  ;;  %v2543_v63 = vadd.f32 %v2542_v58, %v5602_v32  ;;  %v2564_v31 = vmul.f32 %v5604_v5, %v5604_v5 }
 0x3c8   : > { %v2356_v61 = vsel %vm2341_vm3, %v2338_v46, %v2314_v25  ;;  %v2353_v4 = vsel %vm2341_vm3, %v2316_v57, %v2324_v30  ;;  %v2388_v62 = vmul.f32 %v5502_v42, %v2352_v23 }
 0x3c9   : > { %v2579_v39 = vadd.f32 %v2578_v2, %v2563_v24  ;;  %2576 = vadd.xlane.f32.xlu0 %v2575_v43  ;;  %v2544_v41 = vadd.f32 %v2543_v63, %v5604_v5  ;;  %v2387_v38 = vmul.f32 %v5499_v37, %v2356_v61  ;;  %v2392_v43 = vmul.f32 %v5502_v42, %v2353_v4 }
 0x3cb   : > { %v2340_v21 = vpop.permute.xlu0 %2339  ;;  %v2330_v1 = vpop.permute.xlu1 %2329  ;;  %v2580_v26 = vadd.f32 %v2579_v39, %v2564_v31  ;;  %v2408_v23 = vadd.f32 %v2392_v43, %v5445_v27 }
 0x3cc   : > { %v2357_v10 = vsel %vm2341_vm3, %v2340_v21, %v2316_v57  ;;  %v2348_v25 = vsel %vm2341_vm3, %v2322_v33, %v2330_v1  ;;  %v2403_v57 = vadd.f32 %v2387_v38, %v5404_v54  ;;  %v2344_v63 = vsel %vm2341_vm3, %v2330_v1, %v2338_v46 }
 0x3cd   : > { %2581 = vadd.xlane.f32.xlu1 %v2580_v26  ;;  %2545 = vadd.xlane.f32.xlu0 %v2544_v41  ;;  %v2391_v24 = vmul.f32 %v5499_v37, %v2357_v10  ;;  %v2404_v41 = vadd.f32 %v2388_v62, %v5426_v7  ;;  %v2389_v33 = vmul.f32 %v5519_v22, %v2348_v25 }
 0x3cf   : > { %v2332_v53 = vpop.permute.xlu0 %2331  ;;  %v2416_v36 = vpop.permute.xlu1 %2415  ;;  %v2407_v46 = vadd.f32 %v2391_v24, %v5424_v34 }
 0x3d0   : > { %v2345_v31 = vsel %vm2341_vm3, %v2332_v53, %v2340_v21  ;;  %v2349_v39 = vsel %vm2341_vm3, %v2324_v30, %v2332_v53  ;;  %v2390_v30 = vmul.f32 %v5532_v47, %v2344_v63 }
 0x3d1   : > { %v2393_v53 = vmul.f32 %v5519_v22, %v2349_v39  ;;  %v2394_v7 = vmul.f32 %v5532_v47, %v2345_v31 }
 0x3d2   : > { %v2406_v25 = vadd.f32 %v2390_v30, %v5447_v28 }
 0x3d3   : > { %v2418_v19 = vpop.permute.xlu0 %2417  ;;  %v2424_v0 = vpop.permute.xlu1 %2423 }
 0x3d4   : > { %v2454_v58 = vsel %vm2443_vm4, %v2416_v36, %v2424_v0 }
 0x3d5   : > { %v2489_v2 = vmul.f32 %v5510_v50, %v2454_v58 }
 0x3d7   : > { %v2426_v26 = vpop.permute.xlu0 %2425  ;;  %v2432_v37 = vpop.permute.xlu1 %2431  ;;  %v2505_v1 = vadd.f32 %v2489_v2, %v2403_v57  ;;  %v2410_v2 = vadd.f32 %v2394_v7, %v5462_v18 }
 0x3d8   : > { %v2455_v42 = vsel %vm2443_vm4, %v2418_v19, %v2426_v26  ;;  %v2450_v54 = vsel %vm2443_vm4, %v2424_v0, %v2432_v37  ;;  %v2405_v0 = vadd.f32 %v2389_v33, %v5464_v29  ;;  %v2409_v29 = vadd.f32 %v2393_v53, %v5471_v40 }
 0x3d9   : > { %v2493_v21 = vmul.f32 %v5510_v50, %v2455_v42  ;;  %v2490_v61 = vmul.f32 %v5528_v45, %v2450_v54  ;;  %v5663_v22 = vmul.f32 0.11111111, %v2505_v1 }
 0x3db   : > { %v2509_v10 = vadd.f32 %v2493_v21, %v2407_v46  ;;  %v2506_v4 = vadd.f32 %v2490_v61, %v2404_v41  ;;  %v2434_v38 = vpop.permute.xlu0 %2433  ;;  %v2440_v62 = vpop.permute.xlu1 %2439  ;;  %v2565_v54 = vmul.f32 %v5663_v22, %v5663_v22 }
 0x3dc   : > { %v2451_v34 = vsel %vm2443_vm4, %v2426_v26, %v2434_v38  ;;  %v2446_v50 = vsel %vm2443_vm4, %v2432_v37, %v2440_v62  ;;  %v2458_v58 = vsel %vm2443_vm4, %v2440_v62, %v2416_v36 }
 0x3dd   : > { %v5665_v47 = vmul.f32 0.11111111, %v2506_v4  ;;  %v2494_v27 = vmul.f32 %v5528_v45, %v2451_v34  ;;  %v2491_v24 = vmul.f32 %v5535_v3, %v2446_v50  ;;  %v2492_v43 = vmul.f32 %v5557_v60, %v2458_v58 }
 0x3de   : > { %v5673_v57 = vmul.f32 0.11111111, %v2509_v10 }
 0x3df   : > { %v2510_v63 = vadd.f32 %v2494_v27, %v2408_v23  ;;  %v2507_v36 = vadd.f32 %v2491_v24, %v2405_v0  ;;  %v2442_v31 = vpop.permute.xlu0 %2441  ;;  %v2547_v39 = vadd.f32 %v5665_v47, %v5663_v22  ;;  %v2508_v26 = vadd.f32 %v2492_v43, %v2406_v25 }
 0x3e0   : > { %v2447_v45 = vsel %vm2443_vm4, %v2434_v38, %v2442_v31  ;;  %v2459_v28 = vsel %vm2443_vm4, %v2442_v31, %v2418_v19  ;;  %v2566_v18 = vmul.f32 %v5665_v47, %v5665_v47  ;;  %v2569_v53 = vmul.f32 %v5673_v57, %v5673_v57 }
 0x3e1   : > { %v5683_v40 = vmul.f32 0.11111111, %v2510_v63  ;;  %v5685_v37 = vmul.f32 0.11111111, %v2507_v36  ;;  %v2495_v41 = vmul.f32 %v5535_v3, %v2447_v45  ;;  %v2496_v33 = vmul.f32 %v5557_v60, %v2459_v28 }
 0x3e2   : > { %v5689_v42 = vmul.f32 0.11111111, %v2508_v26  ;;  %v2583_v21 = vadd.f32 %v2566_v18, %v2565_v54 }
 0x3e3   : > { %v2511_v46 = vadd.f32 %v2495_v41, %v2409_v29  ;;  %v2512_v1 = vadd.f32 %v2496_v33, %v2410_v2  ;;  %v2548_v35 = vadd.f32 %v2547_v39, %v5685_v37  ;;  %v2567_v19 = vmul.f32 %v5685_v37, %v5685_v37  ;;  %v2529_v33 = vld [vmem:[%s4737_s14] sm:$0xff] }
 0x3e4   : > { %v2570_v61 = vmul.f32 %v5683_v40, %v5683_v40  ;;  %v2552_v60 = vadd.f32 %v5683_v40, %v5673_v57  ;;  %v2568_v7 = vmul.f32 %v5689_v42, %v5689_v42 }
 0x3e5   : > { %v5698_v30 = vmul.f32 0.11111111, %v2511_v46  ;;  %v2549_v3 = vadd.f32 %v2548_v35, %v5689_v42  ;;  %v2584_v23 = vadd.f32 %v2583_v21, %v2567_v19  ;;  %v5707_v10 = vmul.f32 0.11111111, %v2512_v1  ;;  %v2530_v1 = vld [vmem:[%s4737_s14 + $0x8] sm:$0xff] }
 0x3e6   : > { %v2588_v62 = vadd.f32 %v2570_v61, %v2569_v53  ;;  %v2533_v61 = vld [vmem:[%s4742_s16] sm:$0xff] }
 0x3e7   : > { %2550 = vadd.xlane.f32.xlu0 %v2549_v3  ;;  %v2553_v4 = vadd.f32 %v2552_v60, %v5698_v30  ;;  %v2571_v38 = vmul.f32 %v5698_v30, %v5698_v30  ;;  %v2585_v34 = vadd.f32 %v2584_v23, %v2568_v7  ;;  %v2572_v58 = vmul.f32 %v5707_v10, %v5707_v10  ;;  %v2534_v3 = vld [vmem:[%s4742_s16 + $0x8] sm:$0xff] }
 0x3e9   : > { %v2554_v0 = vadd.f32 %v2553_v4, %v5707_v10  ;;  %v2589_v50 = vadd.f32 %v2588_v62, %v2571_v38 }
 0x3eb   : > { %2555 = vadd.xlane.f32.xlu1 %v2554_v0  ;;  %2586 = vadd.xlane.f32.xlu0 %v2585_v34  ;;  %v2590_v27 = vadd.f32 %v2589_v50, %v2572_v58 }
 0x3ef   : > { %2591 = vadd.xlane.f32.xlu1 %v2590_v27 }
 0x454   : > { %v2541_v24 = vpop.xlane.xlu1 %2540 }
 0x455   : > { %v2593_v25 = vmul.f32 0.001953125, %v2541_v24 }
 0x456   : > { %v2577_v2 = vpop.xlane.xlu0 %2576 }
 0x457   : > { %v2601_v29 = vmul.f32 %v2593_v25, %v2593_v25  ;;  %v2597_v43 = vmul.f32 0.001953125, %v2577_v2 }
 0x459   : > { %v2605_v63 = vsub.f32 %v2597_v43, %v2601_v29 }
 0x45a   : > { %v2546_v36 = vpop.xlane.xlu0 %2545  ;;  %v2582_v31 = vpop.xlane.xlu1 %2581 }
 0x45b   : > { %v2609_v39 = vadd.f32 1e-05, %v2605_v63  ;;  %v2594_v26 = vmul.f32 0.001953125, %v2546_v36  ;;  %v2598_v28 = vmul.f32 0.001953125, %v2582_v31  ;;  %v2531_v63 = vld [vmem:[%s4737_s14 + $0x10] sm:$0xff] }
 0x45d   : > { %4492 = vrsqrt.f32 %v2609_v39  ;;  %v2602_v45 = vmul.f32 %v2594_v26, %v2594_v26  ;;  %v2535_v39 = vld [vmem:[%s4742_s16 + $0x10] sm:$0xff] }
 0x45f   : > { %v2606_v18 = vsub.f32 %v2598_v28, %v2602_v45 }
 0x461   : > { %v2610_v41 = vadd.f32 1e-05, %v2606_v18 }
 0x463   : > { %4494 = vrsqrt.f32 %v2610_v41 }
 0x467   : > { %v4493_v54 = vpop.eup %4492 }
 0x468   : > { %v2617_v46 = vmul.f32 %v4493_v54, %v2529_v33  ;;  %v2536_v33 = vld [vmem:[%s4742_s16 + $0x18] sm:$0xff] }
 0x46a   : > { %2631 = vperm.xlu0 %4418, %v2617_v46   ;;  %v2621_v21 = vmul.f32 %v2617_v46, %v2593_v25 }
 0x46c   : > { %v2625_v53 = vsub.f32 %v2533_v61, %v2621_v21 }
 0x46d   : > { %v4495_v35 = vpop.eup %4494 }
 0x46e   : > { %v2618_v19 = vmul.f32 %v4495_v35, %v2530_v1 }
 0x470   : > { %2636 = vperm.xlu1 %4419, %v2618_v19   ;;  %v2622_v60 = vmul.f32 %v2618_v19, %v2594_v26  ;;  %v2532_v26 = vld [vmem:[%s4737_s14 + $0x18] sm:$0xff] }
 0x472   : > { %v2626_v7 = vsub.f32 %v2534_v3, %v2622_v60 }
 0x474   : > { %v2551_v23 = vpop.xlane.xlu0 %2550  ;;  %2667 = vperm.xlu1 %4419, %v2625_v53   ;;  %2672 = vperm.xlu0 %4418, %v2626_v7  }
 0x475   : > { %v2595_v4 = vmul.f32 0.001953125, %v2551_v23 }
 0x477   : > { %v2603_v0 = vmul.f32 %v2595_v4, %v2595_v4 }
 0x478   : > { %v2587_v38 = vpop.xlane.xlu0 %2586  ;;  %v2556_v62 = vpop.xlane.xlu1 %2555 }
 0x479   : > { %v2599_v34 = vmul.f32 0.001953125, %v2587_v38  ;;  %v2596_v50 = vmul.f32 0.001953125, %v2556_v62 }
 0x47b   : > { %v2607_v58 = vsub.f32 %v2599_v34, %v2603_v0  ;;  %v2604_v25 = vmul.f32 %v2596_v50, %v2596_v50 }
 0x47c   : > { %v2592_v27 = vpop.xlane.xlu1 %2591 }
 0x47d   : > { %v2611_v24 = vadd.f32 1e-05, %v2607_v58  ;;  %v2600_v29 = vmul.f32 0.001953125, %v2592_v27 }
 0x47f   : > { %4496 = vrsqrt.f32 %v2611_v24  ;;  %v2608_v2 = vsub.f32 %v2600_v29, %v2604_v25 }
 0x481   : > { %v2612_v43 = vadd.f32 1e-05, %v2608_v2 }
 0x483   : > { %4498 = vrsqrt.f32 %v2612_v43 }
 0x489   : > { %v4497_v36 = vpop.eup %4496 }
 0x48a   : > { %v2619_v31 = vmul.f32 %v4497_v36, %v2531_v63 }
 0x48c   : > { %2641 = vperm.xlu1 %4419, %v2619_v31   ;;  %v2623_v45 = vmul.f32 %v2619_v31, %v2595_v4 }
 0x48d   : > { %v4499_v28 = vpop.eup %4498 }
 0x48e   : > { %v2627_v18 = vsub.f32 %v2535_v39, %v2623_v45  ;;  %v2620_v41 = vmul.f32 %v4499_v28, %v2532_v26 }
 0x490   : > { %2677 = vperm.xlu1 %4419, %v2627_v18   ;;  %2646 = vperm.xlu0 %4418, %v2620_v41   ;;  %v2624_v54 = vmul.f32 %v2620_v41, %v2596_v50 }
 0x492   : > { %v2628_v46 = vsub.f32 %v2536_v33, %v2624_v54 }
 0x494   : > { %2682 = vperm.xlu0 %4418, %v2628_v46  }
 0x4e9   : > { %v2632_v1 = vpop.permute.xlu0 %2631 }
 0x4ea   : > { %v2649_v60 = vmul.f32 %v2632_v1, %v5567_v6  ;;  %v2650_v53 = vmul.f32 %v2632_v1, %v5569_v8  ;;  %v2651_v7 = vmul.f32 %v2632_v1, %v5589_v16 }
 0x4ef   : > { %v2637_v35 = vpop.permute.xlu1 %2636 }
 0x4f0   : > { %v2653_v19 = vmul.f32 %v2637_v35, %v5577_v56  ;;  %v2654_v21 = vmul.f32 %v2637_v35, %v5587_v15  ;;  %v2655_v61 = vmul.f32 %v2637_v35, %v5602_v32  ;;  %v2656_v3 = vmul.f32 %v2637_v35, %v5604_v5 }
 0x4f1   : > { %v2652_v15 = vmul.f32 %v2632_v1, %v5593_v55 }
 0x4f3   : > { %v2673_v23 = vpop.permute.xlu0 %2672  ;;  %v2668_v4 = vpop.permute.xlu1 %2667 }
 0x4f4   : > { %v5730_v38 = vadd.f32 %v2673_v23, %v2653_v19  ;;  %v5732_v62 = vadd.f32 %v2673_v23, %v2654_v21  ;;  %v5734_v0 = vadd.f32 %v2673_v23, %v2655_v61  ;;  %v5736_v56 = vadd.f32 %v2673_v23, %v2656_v3  ;;  %v2829_v19 = vld [vmem:[%s6138_s7] sm:$0xff] }
 0x4f5   : > { %v5739_v32 = vadd.f32 %v2668_v4, %v2649_v60  ;;  %v5741_v5 = vadd.f32 %v2668_v4, %v2650_v53  ;;  %v5746_v34 = vadd.f32 %v2668_v4, %v2651_v7  ;;  %v5749_v58 = vadd.f32 %v2668_v4, %v2652_v15 }
 0x4f6   : > { %v4175_v6 = vmul.f32 -1.442695, %v5730_v38  ;;  %v4176_v8 = vmul.f32 -1.442695, %v5732_v62  ;;  %v4177_v16 = vmul.f32 -1.442695, %v5734_v0 }
 0x4f7   : > { %v4178_v50 = vmul.f32 -1.442695, %v5736_v56  ;;  %v4171_v27 = vmul.f32 -1.442695, %v5739_v32  ;;  %v4172_v55 = vmul.f32 -1.442695, %v5741_v5 }
 0x4f8   : > { %4500 = vpow2.f32 %v4175_v6  ;;  %v4173_v24 = vmul.f32 -1.442695, %v5746_v34  ;;  %v4174_v25 = vmul.f32 -1.442695, %v5749_v58  ;;  %v5766_v6 = vsel %vm2830_vm5, %v2829_v19, 0 }
 0x4f9   : > { %4502 = vpow2.f32 %v4176_v8 }
 0x4fa   : > { %4504 = vpow2.f32 %v4177_v16 }
 0x4fb   : > { %4506 = vpow2.f32 %v4178_v50 }
 0x4fc   : > { %4508 = vpow2.f32 %v4171_v27 }
 0x4fd   : > { %4510 = vpow2.f32 %v4172_v55 }
 0x4fe   : > { %4512 = vpow2.f32 %v4173_v24 }
 0x4ff   : > { %4514 = vpow2.f32 %v4174_v25 }
 0x502   : > { %v4501_v29 = vpop.eup %4500 }
 0x503   : > { %v4503_v2 = vpop.eup %4502  ;;  %v2753_v43 = vadd.f32 1.0, %v4501_v29 }
 0x504   : > { %v4505_v63 = vpop.eup %4504  ;;  %v2754_v36 = vadd.f32 1.0, %v4503_v2 }
 0x505   : > { %v4507_v31 = vpop.eup %4506  ;;  %v2755_v39 = vadd.f32 1.0, %v4505_v63  ;;  %4516 = vrcp.f32 %v2753_v43 }
 0x506   : > { %v4509_v26 = vpop.eup %4508  ;;  %v2756_v45 = vadd.f32 1.0, %v4507_v31  ;;  %4518 = vrcp.f32 %v2754_v36 }
 0x507   : > { %v4511_v28 = vpop.eup %4510  ;;  %4520 = vrcp.f32 %v2755_v39  ;;  %v2749_v18 = vadd.f32 1.0, %v4509_v26 }
 0x508   : > { %v4513_v41 = vpop.eup %4512  ;;  %4522 = vrcp.f32 %v2756_v45  ;;  %v2750_v33 = vadd.f32 1.0, %v4511_v28 }
 0x509   : > { %v4515_v54 = vpop.eup %4514  ;;  %v2751_v46 = vadd.f32 1.0, %v4513_v41  ;;  %4524 = vrcp.f32 %v2749_v18 }
 0x50a   : > { %v2752_v1 = vadd.f32 1.0, %v4515_v54  ;;  %4526 = vrcp.f32 %v2750_v33 }
 0x50b   : > { %v2642_v35 = vpop.permute.xlu1 %2641  ;;  %4528 = vrcp.f32 %v2751_v46 }
 0x50c   : > { %4530 = vrcp.f32 %v2752_v1  ;;  %v2657_v21 = vmul.f32 %v2642_v35, %v5663_v22  ;;  %v2658_v61 = vmul.f32 %v2642_v35, %v5665_v47  ;;  %v2659_v3 = vmul.f32 %v2642_v35, %v5685_v37 }
 0x50d   : > { %v2660_v23 = vmul.f32 %v2642_v35, %v5689_v42 }
 0x50f   : > { %v2647_v60 = vpop.permute.xlu0 %2646  ;;  %v2678_v53 = vpop.permute.xlu1 %2677 }
 0x510   : > { %v4517_v7 = vpop.eup %4516  ;;  %v2661_v4 = vmul.f32 %v2647_v60, %v5673_v57  ;;  %v2662_v15 = vmul.f32 %v2647_v60, %v5683_v40  ;;  %v5769_v50 = vadd.f32 %v2678_v53, %v2657_v21  ;;  %v5771_v22 = vadd.f32 %v2678_v53, %v2658_v61 }
 0x511   : > { %v4519_v8 = vpop.eup %4518  ;;  %v2801_v16 = vmul.f32 %v4517_v7, %v5730_v38  ;;  %v5773_v47 = vadd.f32 %v2678_v53, %v2659_v3  ;;  %v2663_v42 = vmul.f32 %v2647_v60, %v5698_v30  ;;  %v2664_v57 = vmul.f32 %v2647_v60, %v5707_v10 }
 0x512   : > { %v4521_v37 = vpop.eup %4520  ;;  %v2802_v27 = vmul.f32 %v4519_v8, %v5732_v62  ;;  %v5778_v55 = vadd.f32 %v2678_v53, %v2660_v23  ;;  %v4179_v25 = vmul.f32 -1.442695, %v5769_v50  ;;  %v4180_v29 = vmul.f32 -1.442695, %v5771_v22 }
 0x513   : > { %v4523_v40 = vpop.eup %4522  ;;  %v2803_v24 = vmul.f32 %v4521_v37, %v5734_v0  ;;  %v5782_v38 = vadd.f32 %v2801_v16, %v5117_v13  ;;  %v2683_v2 = vpop.permute.xlu0 %2682  ;;  %v4181_v30 = vmul.f32 -1.442695, %v5773_v47 }
 0x514   : > { %v4525_v43 = vpop.eup %4524  ;;  %v2804_v62 = vmul.f32 %v4523_v40, %v5736_v56  ;;  %v4182_v10 = vmul.f32 -1.442695, %v5778_v55  ;;  %v5789_v63 = vadd.f32 %v2683_v2, %v2661_v4  ;;  %4532 = vpow2.f32 %v4179_v25 }
 0x515   : > { %v4527_v36 = vpop.eup %4526  ;;  %v5792_v0 = vadd.f32 %v2803_v24, %v5149_v20  ;;  %v2797_v13 = vmul.f32 %v4525_v43, %v5739_v32  ;;  %v5795_v31 = vadd.f32 %v2683_v2, %v2662_v15  ;;  %4534 = vpow2.f32 %v4180_v29 }
 0x516   : > { %v4529_v39 = vpop.eup %4528  ;;  %v2798_v26 = vmul.f32 %v4527_v36, %v5741_v5  ;;  %v5798_v56 = vadd.f32 %v2683_v2, %v2663_v42  ;;  %v5800_v45 = vadd.f32 %v2683_v2, %v2664_v57  ;;  %4536 = vpow2.f32 %v4181_v30 }
 0x517   : > { %v4531_v28 = vpop.eup %4530  ;;  %v2799_v18 = vmul.f32 %v4529_v39, %v5746_v34  ;;  %v2813_v41 = vadd.f32 %v2797_v13, %v5100_v59  ;;  %v4183_v20 = vmul.f32 -1.442695, %v5789_v63  ;;  %4538 = vpow2.f32 %v4182_v10 }
 0x518   : > { %v2800_v32 = vmul.f32 %v4531_v28, %v5749_v58  ;;  %v4184_v33 = vmul.f32 -1.442695, %v5795_v31  ;;  %v4185_v5 = vmul.f32 -1.442695, %v5798_v56  ;;  %v4186_v46 = vmul.f32 -1.442695, %v5800_v45 }
 0x519   : > { %v5809_v54 = vadd.f32 %v2799_v18, %v5132_v14  ;;  %4540 = vpow2.f32 %v4183_v20  ;;  %v2814_v34 = vadd.f32 %v2798_v26, %v5114_v12  ;;  %v2818_v59 = vadd.f32 %v2802_v27, %v5135_v17 }
 0x51a   : > { %4542 = vpow2.f32 %v4184_v33  ;;  %v2816_v1 = vadd.f32 %v2800_v32, %v5146_v9  ;;  %v2820_v58 = vadd.f32 %v2804_v62, %v5157_v11  ;;  %v2836_v19 = vand.u32 4294901760, %v2813_v41 }
 0x51b   : > { %4544 = vpow2.f32 %v4185_v5  ;;  %v2834_v35 = vand.u32 4294901760, %v2814_v34  ;;  %v2840_v21 = vand.u32 4294901760, %v5782_v38  ;;  %v2838_v14 = vand.u32 4294901760, %v2818_v59 }
 0x51c   : > { %4546 = vpow2.f32 %v4186_v46  ;;  %v3377_v61 = vand.u32 4294901760, %v2816_v1  ;;  %v3381_v3 = vand.u32 4294901760, %v2820_v58  ;;  %v5820_v12 = vand.u32 4294901760, %v5766_v6 }
 0x51d   : > { %v5817_v60 = vpack.c.bf16 %v2840_v21, %v2836_v19  ;;  %v5822_v53 = vpack.c.bf16 %v2838_v14, %v2834_v35  ;;  %v5824_v17 = vsub.f32 %v2814_v34, %v2834_v35  ;;  %v5828_v7 = vsub.f32 %v2818_v59, %v2838_v14 }
 0x51e   : > { %v5826_v9 = vpack.c.bf16 %v3381_v3, %v3377_v61  ;;  %v4533_v11 = vpop.eup %4532  ;;  %v3379_v23 = vand.u32 4294901760, %v5809_v54  ;;  %v3383_v4 = vand.u32 4294901760, %v5792_v0  ;;  %v5839_v42 = vsub.f32 %v5766_v6, %v5820_v12 }
 0x51f   : > { %v4535_v15 = vpop.eup %4534  ;;  %v2757_v8 = vadd.f32 1.0, %v4533_v11  ;;  %4202 = vmatprep.subr.bf16.mxu0 %v5822_v53  ;;  %v5841_v24 = vsub.f32 %v2816_v1, %v3377_v61  ;;  %v2920_v25 = vand.u32 4294901760, %v5824_v17  ;;  %v5844_v43 = vsub.f32 %v2820_v58, %v3381_v3 }
 0x520   : > { %4250 = vmatprep.subr.bf16.mxu1 %v5826_v9  ;;  %v4537_v16 = vpop.eup %4536  ;;  %v2758_v37 = vadd.f32 1.0, %v4535_v15  ;;  %4204 = vmatpush1.bf16.msra.mxu0 %v5817_v60  ;;  %v5835_v27 = vpack.c.bf16 %v3383_v4, %v3379_v23  ;;  %v2932_v62 = vand.u32 4294901760, %v5828_v7  ;;  %v5848_v10 = vsub.f32 %v2813_v41, %v2836_v19 }
 0x521   : > { %v4539_v57 = vpop.eup %4538  ;;  %v2759_v40 = vadd.f32 1.0, %v4537_v16  ;;  %4548 = vrcp.f32 %v2757_v8  ;;  %v5851_v39 = vand.u32 4294901760, %v5839_v42  ;;  %v2921_v18 = vsub.f32 %v5824_v17, %v2920_v25 }
 0x522   : > { %v2760_v2 = vadd.f32 1.0, %v4539_v57  ;;  %4550 = vrcp.f32 %v2758_v37  ;;  %4252 = vmatpush1.bf16.msra.mxu1 %v5835_v27  ;;  %v3463_v20 = vand.u32 4294901760, %v5841_v24  ;;  %v2933_v41 = vsub.f32 %v5828_v7, %v2932_v62 }
 0x523   : > { %v4541_v29 = vpop.eup %4540  ;;  %4552 = vrcp.f32 %v2759_v40  ;;  %v3475_v33 = vand.u32 4294901760, %v5844_v43  ;;  %v5862_v5 = vsub.f32 %v5782_v38, %v2840_v21  ;;  %v2926_v46 = vand.u32 4294901760, %v5848_v10 }
 0x524   : > { %v4543_v30 = vpop.eup %4542  ;;  %v2761_v6 = vadd.f32 1.0, %v4541_v29  ;;  %4554 = vrcp.f32 %v2760_v2  ;;  %v5866_v34 = vsub.f32 %v5809_v54, %v3379_v23  ;;  %v5869_v59 = vsub.f32 %v5792_v0, %v3383_v4 }
 0x525   : > { %v4545_v36 = vpop.eup %4544  ;;  %v2762_v13 = vadd.f32 1.0, %v4543_v30  ;;  %v5874_v1 = vsub.f32 %v5841_v24, %v3463_v20  ;;  %v2910_v58 = vsub.f32 %v5839_v42, %v5851_v39  ;;  %v2922_v35 = vand.u32 4294901760, %v2921_v18 }
 0x526   : > { %v4547_v26 = vpop.eup %4546  ;;  %v2763_v28 = vadd.f32 1.0, %v4545_v36  ;;  %4556 = vrcp.f32 %v2761_v6  ;;  %v2934_v38 = vand.u32 4294901760, %v2933_v41  ;;  %v5881_v19 = vsub.f32 %v5844_v43, %v3475_v33 }
 0x527   : > { %v2764_v32 = vadd.f32 1.0, %v4547_v26  ;;  %4558 = vrcp.f32 %v2762_v13  ;;  %v5886_v0 = vsub.f32 %v5848_v10, %v2926_v46  ;;  %v2938_v21 = vand.u32 4294901760, %v5862_v5 }
 0x528   : > { %4560 = vrcp.f32 %v2763_v28  ;;  %v3469_v3 = vand.u32 4294901760, %v5866_v34  ;;  %v3465_v4 = vand.u32 4294901760, %v5874_v1  ;;  %v5893_v15 = vand.u32 4294901760, %v2910_v58 }
 0x529   : > { %4562 = vrcp.f32 %v2764_v32  ;;  %v3481_v8 = vand.u32 4294901760, %v5869_v59  ;;  %v4209_v40 = vpack.c.bf16 %v2934_v38, %v2922_v35  ;;  %v3477_v29 = vand.u32 4294901760, %v5881_v19  ;;  %v6139_v19 = vld [vmem:[#allocation7_spill] sm:$0xff] }
 0x52a   : > { %v2939_v6 = vsub.f32 %v5862_v5, %v2938_v21  ;;  %v3470_v26 = vsub.f32 %v5866_v34, %v3469_v3 }
 0x52b   : > { %v4549_v54 = vpop.eup %4548  ;;  %v3482_v32 = vsub.f32 %v5869_v59, %v3481_v8 }
 0x52c   : > { %v4551_v14 = vpop.eup %4550  ;;  %v2805_v61 = vmul.f32 %v4549_v54, %v5769_v50 }
 0x52d   : > { %v4553_v11 = vpop.eup %4552  ;;  %v2806_v23 = vmul.f32 %v4551_v14, %v5771_v22  ;;  %v2928_v22 = vand.u32 4294901760, %v5886_v0 }
 0x52e   : > { %v4555_v16 = vpop.eup %4554  ;;  %v2807_v37 = vmul.f32 %v4553_v11, %v5773_v47  ;;  %v2821_v57 = vadd.f32 %v2805_v61, %v5176_v44 }
 0x52f   : > { %v2808_v2 = vmul.f32 %v4555_v16, %v5778_v55  ;;  %v2822_v30 = vadd.f32 %v2806_v23, %v5183_v48  ;;  %v2940_v23 = vand.u32 4294901760, %v2939_v6  ;;  %v3471_v6 = vand.u32 4294901760, %v3470_v26 }
 0x530   : > { %v4557_v50 = vpop.eup %4556  ;;  %v2823_v13 = vadd.f32 %v2807_v37, %v5193_v51  ;;  %v2844_v44 = vand.u32 4294901760, %v2821_v57 }
 0x531   : > { %v4559_v36 = vpop.eup %4558  ;;  %v2809_v47 = vmul.f32 %v4557_v50, %v5789_v63  ;;  %v2842_v48 = vand.u32 4294901760, %v2822_v30  ;;  %v2824_v18 = vadd.f32 %v2808_v2, %v5203_v52  ;;  %v6140_v52 = vld [vmem:[#allocation8_spill] sm:$0xff] }
 0x532   : > { %v4561_v28 = vpop.eup %4560  ;;  %v2810_v55 = vmul.f32 %v4559_v36, %v5795_v31  ;;  %v5917_v58 = vsub.f32 %v2821_v57, %v2844_v44  ;;  %v3387_v35 = vand.u32 4294901760, %v2823_v13 }
 0x533   : > { %v4563_v41 = vpop.eup %4562  ;;  %v2811_v51 = vmul.f32 %v4561_v28, %v5798_v56  ;;  %v2825_v63 = vadd.f32 %v2809_v47, %v5186_v49  ;;  %v5921_v31 = vsub.f32 %v2822_v30, %v2842_v48  ;;  %v3385_v0 = vand.u32 4294901760, %v2824_v18  ;;  %v6141_v56 = vld [vmem:[#allocation9_spill] sm:$0xff] }
 0x534   : > { %v2812_v38 = vmul.f32 %v4563_v41, %v5800_v45  ;;  %v2826_v54 = vadd.f32 %v2810_v55, %v6139_v19  ;;  %v5924_v11 = vsub.f32 %v2823_v13, %v3387_v35  ;;  %v2950_v30 = vand.u32 4294901760, %v5917_v58 }
 0x535   : > { %v2827_v14 = vadd.f32 %v2811_v51, %v6140_v52  ;;  %v2848_v61 = vand.u32 4294901760, %v2825_v63  ;;  %v5927_v49 = vsub.f32 %v2824_v18, %v3385_v0  ;;  %v2944_v57 = vand.u32 4294901760, %v5921_v31 }
 0x536   : > { %v2846_v16 = vand.u32 4294901760, %v2826_v54  ;;  %v2828_v37 = vadd.f32 %v2812_v38, %v6141_v56  ;;  %v3483_v18 = vand.u32 4294901760, %v3482_v32  ;;  %v2951_v26 = vsub.f32 %v5917_v58, %v2950_v30 }
 0x537   : > { %v5930_v50 = vpack.c.bf16 %v2848_v61, %v2844_v44  ;;  %v5932_v45 = vsub.f32 %v2825_v63, %v2848_v61  ;;  %v3391_v2 = vand.u32 4294901760, %v2827_v14  ;;  %v3487_v41 = vand.u32 4294901760, %v5927_v49 }
 0x538   : > { %v5935_v36 = vpack.c.bf16 %v2846_v16, %v2842_v48  ;;  %v5937_v47 = vsub.f32 %v2826_v54, %v2846_v16  ;;  %v3389_v13 = vand.u32 4294901760, %v2828_v37  ;;  %v2945_v48 = vsub.f32 %v5921_v31, %v2944_v57 }
 0x539   : > { %v5939_v28 = vpack.c.bf16 %v3391_v2, %v3387_v35  ;;  %v5941_v55 = vsub.f32 %v2827_v14, %v3391_v2  ;;  %v2962_v32 = vand.u32 4294901760, %v5932_v45  ;;  %v6127_v35 = vand.u32 4294901760, %v5924_v11 }
 0x53a   : > { %4206 = vmatprep.subr.bf16.mxu0 %v5935_v36  ;;  %v5945_v44 = vpack.c.bf16 %v3389_v13, %v3385_v0  ;;  %v5947_v51 = vsub.f32 %v2828_v37, %v3389_v13  ;;  %v2956_v63 = vand.u32 4294901760, %v5937_v47  ;;  %v4257_v19 = vpack.c.bf16 %v3477_v29, %v3465_v4 }
 0x53b   : > { %4208 = vmatpush1.bf16.msra.mxu0 %v5930_v50  ;;  %v6126_v38 = vand.u32 4294901760, %v5941_v55  ;;  %v3488_v0 = vsub.f32 %v5927_v49, %v3487_v41  ;;  %v4211_v14 = vpack.c.bf16 %v2940_v23, %v2928_v22  ;;  %v3494_v1 = vsub.f32 %v5924_v11, %v6127_v35 }
 0x53c   : > { %4254 = vmatprep.subr.bf16.mxu1 %v5945_v44  ;;  %4210 = vmatprep.subr.bf16.mxu0 %v4209_v40  ;;  %v2957_v54 = vsub.f32 %v5937_v47, %v2956_v63  ;;  %v3499_v52 = vand.u32 4294901760, %v5947_v51  ;;  %v2963_v40 = vsub.f32 %v5932_v45, %v2962_v32  ;;  %v4259_v29 = vpack.c.bf16 %v3483_v18, %v3471_v6 }
 0x53d   : > { %4256 = vmatpush1.bf16.msra.mxu1 %v5939_v28  ;;  %v3506_v4 = vsub.f32 %v5941_v55, %v6126_v38  ;;  %v2946_v61 = vand.u32 4294901760, %v2945_v48  ;;  %v2952_v23 = vand.u32 4294901760, %v2951_v26  ;;  %v3495_v37 = vand.u32 4294901760, %v3494_v1 }
 0x53e   : > { %4258 = vmatprep.subr.bf16.mxu1 %v4257_v19  ;;  %2912 = vmatmul.mubr.f32.vlgmr.msra.gmra.mrb[8].mxu0 %v5893_v15  ;;  %v2958_v16 = vand.u32 4294901760, %v2957_v54  ;;  %v3500_v22 = vsub.f32 %v5947_v51, %v3499_v52  ;;  %v2964_v56 = vand.u32 4294901760, %v2963_v40  ;;  %v6142_v13 = vmov 0.0  }
 0x53f   : > { %4212 = vmatpush1.bf16.msra.mxu0 %v4211_v14  ;;  %v3507_v2 = vand.u32 4294901760, %v3506_v4  ;;  %3022 = vmatprep.mubr.f32.mxu0 %v6142_v13  ;;  %v3489_v19 = vand.u32 4294901760, %v3488_v0  ;;  %v4217_v26 = vpack.c.bf16 %v5828_v7, %v5824_v17  ;;  %v4265_v54 = vpack.c.bf16 %v5844_v43, %v5841_v24 }
 0x540   : > { %3455 = vmatmul.mubr.f32.vlgmr.msra.gmra.mrb[8].mxu1 %v5893_v15  ;;  %v4213_v38 = vpack.c.bf16 %v2958_v16, %v2946_v61  ;;  %v3501_v35 = vand.u32 4294901760, %v3500_v22  ;;  %v4215_v6 = vpack.c.bf16 %v2964_v56, %v2952_v23  ;;  %v4219_v15 = vpack.c.bf16 %v5862_v5, %v5848_v10 }
 0x541   : > { %4260 = vmatpush1.bf16.msra.mxu1 %v4259_v29  ;;  %v4263_v18 = vpack.c.bf16 %v3507_v2, %v3495_v37  ;;  %3565 = vmatprep.mubr.f32.mxu1 %v6142_v13  ;;  %v4269_v0 = vpack.c.bf16 %v5947_v51, %v5927_v49  ;;  %v4223_v14 = vpack.c.bf16 %v5932_v45, %v5917_v58  ;;  %v6143_v43 = vand.u32 4294901760, %v5924_v11  ;;  %v3920_v45 = vld [vmem:[%s553_s19] sm:$0xff] }
 0x542   : > { %4214 = vmatprep.subr.bf16.mxu0 %v4213_v38  ;;  %v4261_v48 = vpack.c.bf16 %v3501_v35, %v3489_v19  ;;  %v4221_v38 = vpack.c.bf16 %v5937_v47, %v5921_v31  ;;  %v4267_v35 = vpack.c.bf16 %v5869_v59, %v5866_v34  ;;  %v4271_v40 = vpack.c.bf16 %v5941_v55, %v5924_v11  ;;  %v3921_v47 = vld [vmem:[%s557_s22] sm:$0xff] }
 0x543   : > { %4216 = vmatpush1.bf16.msra.mxu0 %v4215_v6  ;;  %v4233_v1 = vpack.c.bf16 %v2932_v62, %v2920_v25  ;;  %v4235_v4 = vpack.c.bf16 %v2938_v21, %v2926_v46  ;;  %v4237_v17 = vpack.c.bf16 %v2956_v63, %v2944_v57  ;;  %v4283_v7 = vpack.c.bf16 %v3481_v8, %v3469_v3 }
 0x544   : > { %4262 = vmatprep.subr.bf16.mxu1 %v4261_v48  ;;  %4218 = vmatprep.subr.bf16.mxu0 %v4217_v26  ;;  %v4285_v24 = vpack.c.bf16 %v3499_v52, %v3487_v41  ;;  %v4239_v25 = vpack.c.bf16 %v2962_v32, %v2950_v30  ;;  %v6144_v62 = vand.u32 4294901760, %v5941_v55 }
 0x545   : > { %4264 = vmatpush1.bf16.msra.mxu1 %v4263_v18 }
 0x546   : > { %4266 = vmatprep.subr.bf16.mxu1 %v4265_v54  ;;  %3024 = vmatmul.mubr.f32.vlgmr.msra.gmra.mrb[8].mxu0 %v5820_v12  ;;  %v4287_v10 = vpack.c.bf16 %v6144_v62, %v6143_v43  ;;  %v4584_v43 = vld [vmem:[#allocation2 + $0x10] sm:$0xff] }
 0x547   : > { %4220 = vmatpush1.bf16.msra.mxu0 %v4219_v15  ;;  %3110 = vmatprep.mubr.f32.mxu0 %v6142_v13 }
 0x548   : > { %3567 = vmatmul.mubr.f32.vlgmr.msra.gmra.mrb[8].mxu1 %v5820_v12  ;;  %4222 = vmatprep.subr.bf16.mxu0 %v4221_v38 }
 0x549   : > { %4268 = vmatpush1.bf16.msra.mxu1 %v4267_v35  ;;  %3653 = vmatprep.mubr.f32.mxu1 %v6142_v13 }
 0x54a   : > { %4270 = vmatprep.subr.bf16.mxu1 %v4269_v0 }
 0x54b   : > { %4224 = vmatpush1.bf16.msra.mxu0 %v4223_v14 }
 0x54c   : > { %4226 = vmatprep.subr.bf16.mxu0 %v5822_v53 }
 0x54d   : > { %4272 = vmatpush1.bf16.msra.mxu1 %v4271_v40 }
 0x54e   : > { %4274 = vmatprep.subr.bf16.mxu1 %v5826_v9  ;;  %3113 = vmatmul.mubr.f32.vlgmr.msra.gmra.mrb[8].mxu0 %v5839_v42 }
 0x54f   : > { %4228 = vmatpush1.bf16.msra.mxu0 %v5817_v60  ;;  %3191 = vmatprep.mubr.f32.mxu0 %v6142_v13 }
 0x550   : > { %3656 = vmatmul.mubr.f32.vlgmr.msra.gmra.mrb[8].mxu1 %v5839_v42  ;;  %4230 = vmatprep.subr.bf16.mxu0 %v5935_v36  ;;  %v4281_v42 = vpack.c.bf16 %v3475_v33, %v3463_v20 }
 0x551   : > { %4276 = vmatpush1.bf16.msra.mxu1 %v5835_v27  ;;  %3734 = vmatprep.mubr.f32.mxu1 %v6142_v13 }
 0x552   : > { %4278 = vmatprep.subr.bf16.mxu1 %v5945_v44 }
 0x553   : > { %4232 = vmatpush1.bf16.msra.mxu0 %v5930_v50 }
 0x554   : > { %4234 = vmatprep.subr.bf16.mxu0 %v4233_v1 }
 0x555   : > { %4280 = vmatpush1.bf16.msra.mxu1 %v5939_v28 }
 0x556   : > { %4282 = vmatprep.subr.bf16.mxu1 %v4281_v42  ;;  %3195 = vmatmul.mubr.f32.vlgmr.msra.gmra.mrb[8].mxu0 %v5851_v39 }
 0x557   : > { %4236 = vmatpush1.bf16.msra.mxu0 %v4235_v4  ;;  %3289 = vmatprep.mubr.f32.mxu0 %v6142_v13  ;;  %v4582_v4 = vld [vmem:[#allocation2] sm:$0xff] }
 0x558   : > { %3738 = vmatmul.mubr.f32.vlgmr.msra.gmra.mrb[8].mxu1 %v5851_v39  ;;  %4238 = vmatprep.subr.bf16.mxu0 %v4237_v17 }
 0x559   : > { %4284 = vmatpush1.bf16.msra.mxu1 %v4283_v7  ;;  %3832 = vmatprep.mubr.f32.mxu1 %v6142_v13 }
 0x55a   : > { %4286 = vmatprep.subr.bf16.mxu1 %v4285_v24  ;;  %v4583_v24 = vld [vmem:[#allocation2 + $0x8] sm:$0xff] }
 0x55b   : > { %4240 = vmatpush1.bf16.msra.mxu0 %v4239_v25 }
 0x55c   : > { %4242 = vmatprep.subr.bf16.mxu0 %v5822_v53 }
 0x55d   : > { %4288 = vmatpush1.bf16.msra.mxu1 %v4287_v10  ;;  %v4585_v10 = vld [vmem:[#allocation2 + $0x18] sm:$0xff] }
 0x55e   : > { %4290 = vmatprep.subr.bf16.mxu1 %v5826_v9  ;;  %3291 = vmatmul.mubr.f32.vlgmr.msra.gmra.mrb[8].mxu0 %v5820_v12 }
 0x55f   : > { %4244 = vmatpush1.bf16.msra.mxu0 %v5817_v60  ;;  %3369 = vmatprep.mubr.f32.mxu0 %v6142_v13 }
 0x560   : > { %3834 = vmatmul.mubr.f32.vlgmr.msra.gmra.mrb[8].mxu1 %v5820_v12  ;;  %4246 = vmatprep.subr.bf16.mxu0 %v5935_v36 }
 0x561   : > { %4292 = vmatpush1.bf16.msra.mxu1 %v5835_v27  ;;  %3912 = vmatprep.mubr.f32.mxu1 %v6142_v13 }
 0x562   : > { %4294 = vmatprep.subr.bf16.mxu1 %v5945_v44 }
 0x563   : > { %4248 = vmatpush1.bf16.msra.mxu0 %v5930_v50 }
 0x565   : > { %4296 = vmatpush1.bf16.msra.mxu1 %v5939_v28 }
 0x566   : > { %3371 = vmatmul.mubr.f32.vlgmr.msra.gmra.mrb[8].mxu0 %v5820_v12 }
 0x568   : > { %3914 = vmatmul.mubr.f32.vlgmr.msra.gmra.mrb[8].mxu1 %v5820_v12 }
 0x639   : > { %v3372_v60 = vpop.f32.mrb[8].mxu0 }
 0x63a   : > { %v3927_v53 = vmul.f32 %v3372_v60, %v3372_v60  ;;  %v3374_v9 = vpop.f32.mrb[9].mxu0 }
 0x63b   : > { %v3915_v39 = vpop.f32.mrb[8].mxu1  ;;  %v3922_v20 = vadd.f32 %v3374_v9, %v3372_v60  ;;  %v3928_v33 = vmul.f32 %v3374_v9, %v3374_v9 }
 0x63c   : > { %v3917_v5 = vpop.f32.mrb[9].mxu1  ;;  %v3929_v27 = vmul.f32 %v3915_v39, %v3915_v39 }
 0x63d   : > { %v3931_v46 = vadd.f32 %v3928_v33, %v3927_v53  ;;  %v3923_v34 = vadd.f32 %v3922_v20, %v3915_v39  ;;  %v3930_v21 = vmul.f32 %v3917_v5, %v3917_v5 }
 0x63f   : > { %v3924_v59 = vadd.f32 %v3923_v34, %v3917_v5  ;;  %v3932_v3 = vadd.f32 %v3931_v46, %v3929_v27 }
 0x641   : > { %3925 = vadd.xlane.f32.xlu1 %v3924_v59  ;;  %v3933_v8 = vadd.f32 %v3932_v3, %v3930_v21 }
 0x643   : > { %3934 = vadd.xlane.f32.xlu0 %v3933_v8 }
 0x6ce   : > { %v3926_v58 = vpop.xlane.xlu1 %3925 }
 0x6cf   : > { %v3936_v12 = vmul.f32 0.001953125, %v3926_v58 }
 0x6d0   : > { %v3935_v31 = vpop.xlane.xlu0 %3934 }
 0x6d1   : > { %v3938_v11 = vmul.f32 %v3936_v12, %v3936_v12  ;;  %v3937_v49 = vmul.f32 0.001953125, %v3935_v31 }
 0x6d3   : > { %v3939_v57 = vsub.f32 %v3937_v49, %v3938_v11 }
 0x6d5   : > { %v3940_v50 = vadd.f32 1e-05, %v3939_v57 }
 0x6d7   : > { %4564 = vrsqrt.f32 %v3940_v50 }
 0x6e1   : > { %v4565_v30 = vpop.eup %4564 }
 0x6e2   : > { %v3942_v36 = vmul.f32 %v4565_v30, %v3920_v45 }
 0x6e4   : > { %3947 = vperm.xlu0 %4418, %v3942_v36   ;;  %v3943_v28 = vmul.f32 %v3942_v36, %v3936_v12 }
 0x6e6   : > { %v3944_v55 = vsub.f32 %v3921_v47, %v3943_v28 }
 0x6e8   : > { %3956 = vperm.xlu1 %4419, %v3944_v55  }
 0x763   : > { %v3948_v41 = vpop.permute.xlu0 %3947 }
 0x764   : > { %v3950_v44 = vmul.f32 %v3948_v41, %v3372_v60  ;;  %v3951_v51 = vmul.f32 %v3948_v41, %v3374_v9  ;;  %v3952_v63 = vmul.f32 %v3948_v41, %v3915_v39  ;;  %v3953_v32 = vmul.f32 %v3948_v41, %v3917_v5 }
 0x767   : > { %v3957_v52 = vpop.permute.xlu1 %3956 }
 0x768   : > { %v3959_v29 = vadd.f32 %v3957_v52, %v3950_v44  ;;  %v3960_v61 = vadd.f32 %v3957_v52, %v3951_v51  ;;  %v3961_v16 = vadd.f32 %v3957_v52, %v3952_v63  ;;  %v3962_v22 = vadd.f32 %v3957_v52, %v3953_v32 }
 0x76a   : > { %v4187_v23 = vmul.f32 -1.442695, %v3959_v29  ;;  %v4188_v56 = vmul.f32 -1.442695, %v3960_v61  ;;  %v4189_v37 = vmul.f32 -1.442695, %v3961_v16 }
 0x76b   : > { %v4190_v2 = vmul.f32 -1.442695, %v3962_v22 }
 0x76c   : > { %4566 = vpow2.f32 %v4187_v23 }
 0x76d   : > { %4568 = vpow2.f32 %v4188_v56 }
 0x76e   : > { %4570 = vpow2.f32 %v4189_v37 }
 0x76f   : > { %4572 = vpow2.f32 %v4190_v2 }
 0x776   : > { %v4567_v13 = vpop.eup %4566 }
 0x777   : > { %v4569_v19 = vpop.eup %4568  ;;  %v3975_v6 = vadd.f32 1.0, %v4567_v13 }
 0x778   : > { %v4571_v18 = vpop.eup %4570  ;;  %v3976_v48 = vadd.f32 1.0, %v4569_v19 }
 0x779   : > { %v4573_v26 = vpop.eup %4572  ;;  %v3977_v54 = vadd.f32 1.0, %v4571_v18  ;;  %4574 = vrcp.f32 %v3975_v6 }
 0x77a   : > { %v3978_v15 = vadd.f32 1.0, %v4573_v26  ;;  %4576 = vrcp.f32 %v3976_v48 }
 0x77b   : > { %4578 = vrcp.f32 %v3977_v54 }
 0x77c   : > { %4580 = vrcp.f32 %v3978_v15 }
 0x783   : > { %v4575_v38 = vpop.eup %4574 }
 0x784   : > { %v4577_v35 = vpop.eup %4576  ;;  %v3987_v0 = vmul.f32 %v4575_v38, %v3959_v29 }
 0x785   : > { %v4579_v14 = vpop.eup %4578  ;;  %v3988_v40 = vmul.f32 %v4577_v35, %v3960_v61  ;;  %4002 = sbr.rel (%p4191_p5) target bundleno = 1932 (0x78c), region = 80 }
 0x786   : > { %v4581_v1 = vpop.eup %4580  ;;  %v3989_v42 = vmul.f32 %v4579_v14, %v3961_v16  ;;  %v3991_v17 = vadd.f32 %v4582_v4, %v3987_v0 }
 0x787   : > { %v3990_v7 = vmul.f32 %v4581_v1, %v3962_v22  ;;  %v3992_v25 = vadd.f32 %v4583_v24, %v3988_v40 }
 0x788   : > { %v3993_v62 = vadd.f32 %v4584_v43, %v3989_v42  ;;  %3995 = vst [vmem:[#allocation2] sm:$0xff] %v3991_v17  ;;  %4003 = vst [vmem:[#allocation3] sm:$0xff] (!%p4191_p5), %v3991_v17 }
 0x789   : > { %v3994_v60 = vadd.f32 %v4585_v10, %v3990_v7  ;;  %3996 = vst [vmem:[#allocation2 + $0x8] sm:$0xff] %v3992_v25  ;;  %4004 = vst [vmem:[#allocation3 + $0x8] sm:$0xff] (!%p4191_p5), %v3992_v25 }
 0x78a   : > { %3997 = vst [vmem:[#allocation2 + $0x10] sm:$0xff] %v3993_v62  ;;  %4005 = vst [vmem:[#allocation3 + $0x10] sm:$0xff] (!%p4191_p5), %v3993_v62 }
 0x78b   : > { %3998 = vst [vmem:[#allocation2 + $0x18] sm:$0xff] %v3994_v60  ;;  %4006 = vst [vmem:[#allocation3 + $0x18] sm:$0xff] (!%p4191_p5), %v3994_v60 }
 0x78c PF: > { %p4401_p6 = scmp.eq.s32.totalorder %s4707_s26, 1  ;;  %s4630_s29 = smov [#allocation3]  }
 0x78d   : > { %s4014_s19 = sshll.u32 %s4630_s29, 4  ;;  %s4015_s19 = int_to_ptr.vmem [resolvable:$true] %s4014_s19 }
 0x78e   : > { %s4586_s22 = scalar_lea.vmem %s4015_s19, 512  ;;  %p4593_p10 = scmp.lt.s32.totalorder %s4015_s19, %s4015_s19 }
 0x78f   : > { %p4587_p7 = scmp.ne.s32.totalorder %s4015_s19, %s4586_s22  ;;  %p4594_p11 = scmp.lt.s32.totalorder %s4586_s22, %s4586_s22 }
 0x791   : > { %p4588_p8 = pnand %p4587_p7, %p4401_p6  ;;  %p4595_p12 = por %p4594_p11, %p4593_p10 }
 0x793   : > { %p4589_p9 = pneg %p4588_p8 }
 0x795   : > { %p4596_p13 = pnand %p4595_p12, %p4589_p9 }
 0x797   : > { %4599 = shalt.err (!%p4596_p13)
}
 0x798   : > { %s4600_s17 = scalar_lea.hbm %s6119_s13, 512 }
 0x799   : > { %p4601_p0 = scmp.ne.s32.totalorder %s6119_s13, %s4600_s17  ;;  %p4606_p3 = scmp.lt.u32.totalorder %s4600_s17, %s6119_s13 }
 0x79b   : > { %p4602_p1 = pnand %p4601_p0, %p4401_p6 }
 0x79d   : > { %p4603_p2 = pneg %p4602_p1 }
 0x79f   : > { %p4608_p4 = pnand %p4606_p3, %p4603_p2 }
 0x7a1   : > { %4611 = shalt.err (!%p4608_p4)
}
 0x7a2   : > { %4398 = dma.vmem_to_hbm [thread:$0]  (%p4401_p6), %s4015_s19, 512, %s6119_s13, [#allocation4]  }
 0x7a3   : > { %4617 = dma.done.wait (%p4401_p6), [#allocation4], 512  }
 0x7a4   : > { %4619 = vsyncadd (%p4401_p6), [#allocation4], 4294966784 }
 0x7a5 PF: > { %s6145_s14 = sld [smem:[#allocation6_spill]] }
 0x7ab   : > { %s24_s25 = sadd.s32 1, %s6145_s14  }
 0x7ac   : > { %p21_p5 = scmp.ge.s32.totalorder %s24_s25, 4  }
 0x7ae   :  { %23 = sbr.rel (!%p21_p5) target bundleno = 5 (0x5), region = 128 }
 0x7b5   :  { %4027 = vsyncpa [#allocation4], 1 }
 0x7b6   :  { %4029 = vsyncpa [#allocation4 + $0x1], 1 }

</bundles_post_ra>
